<compile_context>
chip_gen: v5e
topology: v5e:2x2
jax: 0.10.0
libtpu: 0.0.40
codegen_flags: <defaults>
</compile_context>

<pallas_src>
import jax
import jax.numpy as jnp
from jax import lax
from jax.experimental import pallas as pl
from jax.experimental.pallas import tpu as pltpu


# Scoped-VMEM request: within defaults on v6e/v7x, raises v5e's 16 MiB default
# (physical VMEM is 128/128/64 MiB on v5e/v6e/v7x, so 32 MiB is safe everywhere).
_VMEM_LIMIT_BYTES = 32 * 1024 * 1024
# Per (double-buffered) feature buffer budget: 2 x 8 MiB + ~1 MiB resident weight
# stays well under the 32 MiB scoped limit on every generation.
_FEAT_BUDGET_BYTES = 8 * 1024 * 1024


def _fused_pool_heads_kernel(feat_ref, w_ref, b_ref, out_ref):
    """out[i, o] = b[o] + sum_k feat[i, k] * w[o, k]   (single MXU matmul, f32 acc)."""
    out_ref[...] = b_ref[...] + lax.dot_general(
        feat_ref[...],                       # (TN, K), consumed in incoming dtype
        w_ref[...],                          # (4, K), lane-dense, grid-invariant
        dimension_numbers=(((1,), (1,)), ((), ())),   # contract both last dims (A @ B.T)
        preferred_element_type=jnp.float32,
    )


def _pick_batch_tile(n, k, itemsize, budget_bytes=_FEAT_BUDGET_BYTES):
    """Batch tile: multiple of the sublane pack (8 f32 / 16 bf16 / 32 int8), largest
    power-of-two multiple dividing n whose double-buffered (tn, K) feature block fits
    the budget; capped so there are >= 2 batch tiles when possible (v7x megacore)."""
    sub = {4: 8, 2: 16, 1: 32}.get(itemsize, 8)
    if n % sub != 0:
        return n                              # full-extent block is always legal
    tn = sub
    while n % (tn * 2) == 0 and (tn * 2) * k * itemsize * 2 <= budget_bytes:
        tn *= 2
    # Keep >= 2 batch tiles so the "parallel" grid axis shards across v7x's two
    # TensorCores (one extra ~0.35us grid step on single-TC v5e/v6e: negligible).
    if tn == n and n % (2 * sub) == 0:
        tn = n // 2
    return tn


def fuse_head_params(w1, b1, w2, b2, hw, weight_dtype=jnp.float32):
    """Fold adaptive_avg_pool2d((1,1)) + head_1 + head_2 Linear(1280, 2) into one
    (4, C*HW) transposed weight and a (1, 4) f32 bias.  Build ONCE at model init
    (hoisted out of the per-call path).  Dropout(0.2) is identity in eval mode."""
    w_cat_t = jnp.concatenate([w1, w2], axis=1).astype(jnp.float32).T        # (4, C)
    # w_fused[o, c*HW + j] = W[c, o] / HW  -> pooling folded into the contraction.
    w_fused = (jnp.repeat(w_cat_t, hw, axis=1) / jnp.float32(hw)).astype(weight_dtype)
    b_fused = jnp.concatenate(
        [b1.astype(jnp.float32), b2.astype(jnp.float32)]).reshape(1, 4)      # (1, 4)
    return w_fused, b_fused


def classifier_heads(features_nchw, w_fused, b_fused, *, batch_tile=None):
    """Global-average-pool + both Linear(1280, 2) heads of `classifier`.

    features_nchw: (N, C, H, W) backbone feature map, float32 or bfloat16.
    w_fused:       (4, C*H*W) pool-scaled fused weight from fuse_head_params.
    b_fused:       (1, 4) f32 fused bias.
    Returns (glass, mask), each (N, 2) float32.
    """
    n, c, h, w = features_nchw.shape
    k = c * h * w
    if w_fused.shape != (4, k):
        raise ValueError(f"w_fused shape {w_fused.shape} != (4, {k})")

    # Free reshape: NCHW is row-major, so (N, C*H*W) is a bitcast -- no HBM copy.
    feat = features_nchw.reshape(n, k)

    tn = batch_tile if batch_tile is not None else _pick_batch_tile(
        n, k, feat.dtype.itemsize)
    if n % tn != 0 or (tn % 8 != 0 and tn != n):
        raise ValueError(f"batch_tile={tn} incompatible with N={n}")
    grid = (n // tn,)

    out = pl.pallas_call(
        _fused_pool_heads_kernel,
        out_shape=jax.ShapeDtypeStruct((n, 4), jnp.float32),
        grid=grid,
        in_specs=[
            pl.BlockSpec((tn, k), lambda i: (i, 0)),   # contiguous, lane-dense rows
            pl.BlockSpec((4, k), lambda i: (0, 0)),    # grid-invariant fused weight
            pl.BlockSpec((1, 4), lambda i: (0, 0)),    # grid-invariant fused bias
        ],
        out_specs=pl.BlockSpec((tn, 4), lambda i: (i, 0)),
        compiler_params=pltpu.CompilerParams(
            dimension_semantics=("parallel",),
            vmem_limit_bytes=_VMEM_LIMIT_BYTES,
        ),
        cost_estimate=pl.CostEstimate(
            flops=2 * n * k * 4,
            transcendentals=0,
            bytes_accessed=(n * k * feat.dtype.itemsize
                            + 4 * k * w_fused.dtype.itemsize
                            + n * 4 * 4 + 16),
        ),
    )(feat, w_fused, b_fused)

    glass = out[:, 0:2]
    mask = out[:, 2:4]
    return glass, mask


def _init_linear(key, in_features, out_features):
    # Deterministic init mimicking nn.Linear default: U(-1/sqrt(in), 1/sqrt(in)).
    kw, kb = jax.random.split(key)
    bound = 1.0 / float(in_features) ** 0.5
    w = jax.random.uniform(kw, (in_features, out_features), jnp.float32,
                           minval=-bound, maxval=bound)
    b = jax.random.uniform(kb, (out_features,), jnp.float32,
                           minval=-bound, maxval=bound)
    return w, b


def _reference(features_nchw, w1, b1, w2, b2):
    f = features_nchw.astype(jnp.float32)
    pooled = jnp.mean(f, axis=(2, 3))   # adaptive_avg_pool2d((1,1)) + flatten
    return pooled @ w1 + b1, pooled @ w2 + b2


if __name__ == "__main__":
    key = jax.random.PRNGKey(0)
    k_feat, k_h1, k_h2 = jax.random.split(key, 3)

    # Small synthetic EfficientNet-b0 feature map.  C=1280 is fixed by the heads
    # (Linear(1280, 2)); batch/spatial kept small: (N, C, H, W) = (16, 1280, 4, 4).
    N, C, H, W = 16, 1280, 4, 4
    features = jax.random.normal(k_feat, (N, C, H, W), jnp.float32)

    w1, b1 = _init_linear(k_h1, C, 2)   # head_1: Linear(1280, 2)
    w2, b2 = _init_linear(k_h2, C, 2)   # head_2: Linear(1280, 2)

    ref_glass, ref_mask = _reference(features, w1, b1, w2, b2)

    # f32 path (matches the PyTorch module, which runs in float32).
    w_f32, b_fused = fuse_head_params(w1, b1, w2, b2, H * W, jnp.float32)
    glass, mask = classifier_heads(features, w_f32, b_fused)
    jax.block_until_ready((glass, mask))
    assert jnp.allclose(glass, ref_glass, atol=1e-4, rtol=1e-4)
    assert jnp.allclose(mask, ref_mask, atol=1e-4, rtol=1e-4)

    # bf16 path: bf16 features x bf16 fused weight straight to the MXU, f32 accumulate.
    w_bf16, _ = fuse_head_params(w1, b1, w2, b2, H * W, jnp.bfloat16)
    glass_bf, mask_bf = classifier_heads(features.astype(jnp.bfloat16), w_bf16, b_fused)
    jax.block_until_ready((glass_bf, mask_bf))
    assert jnp.allclose(glass_bf, ref_glass, atol=2e-2, rtol=2e-2)
    assert jnp.allclose(mask_bf, ref_mask, atol=2e-2, rtol=2e-2)

    print("KERNEL_OK")
</pallas_src>

<mosaic_0001>
module attributes {stable_mosaic.version = 11 : i64} {
  func.func @_fused_pool_heads_kernel(%arg0: i32, %arg1: memref<8x20480xf32, #tpu.memory_space<vmem>>, %arg2: memref<4x20480xf32, #tpu.memory_space<vmem>>, %arg3: memref<1x4xf32, #tpu.memory_space<vmem>>, %arg4: memref<8x4xf32, #tpu.memory_space<vmem>>) attributes {dimension_semantics = [#tpu.dimension_semantics<parallel>], iteration_bounds = array<i64: 2>, scalar_prefetch = 0 : i64, scratch_operands = 0 : i64, tpu.core_type = #tpu.core_type<tc>, window_params = [{transform_indices = @transform_0, window_bounds = array<i64: 8, 20480>}, {pipeline_mode = #tpu.pipeline_mode<synchronous>, transform_indices = @transform_1, window_bounds = array<i64: 4, 20480>}, {pipeline_mode = #tpu.pipeline_mode<synchronous>, transform_indices = @transform_2, window_bounds = array<i64: 1, 4>}, {transform_indices = @transform_3, window_bounds = array<i64: 8, 4>}]} {
    %c0 = arith.constant 0 : index
    %c0_0 = arith.constant 0 : index
    %0 = vector.load %arg3[%c0, %c0_0] : memref<1x4xf32, #tpu.memory_space<vmem>>, vector<1x4xf32>
    %c0_1 = arith.constant 0 : index
    %c0_2 = arith.constant 0 : index
    %1 = vector.load %arg1[%c0_1, %c0_2] : memref<8x20480xf32, #tpu.memory_space<vmem>>, vector<8x20480xf32>
    %c0_3 = arith.constant 0 : index
    %c0_4 = arith.constant 0 : index
    %2 = vector.load %arg2[%c0_3, %c0_4] : memref<4x20480xf32, #tpu.memory_space<vmem>>, vector<4x20480xf32>
    %cst = arith.constant dense<0.000000e+00> : vector<8x4xf32>
    %3 = tpu.matmul %1, %2, %cst {dimension_numbers = #tpu.dot_dimension_numbers<[1], [1], [0], [0], [0, 0, 1, 0], [], []>} : vector<8x20480xf32>, vector<4x20480xf32>, vector<8x4xf32> -> vector<8x4xf32>
    %4 = vector.broadcast %0 : vector<1x4xf32> to vector<8x4xf32>
    %5 = arith.addf %4, %3 : vector<8x4xf32>
    %c0_5 = arith.constant 0 : index
    %c0_6 = arith.constant 0 : index
    %6 = vector.load %arg4[%c0_5, %c0_6] : memref<8x4xf32, #tpu.memory_space<vmem>>, vector<8x4xf32>
    tpu.vector_store %arg4[%c0_5, %c0_6], %5 {strides = array<i32>} : memref<8x4xf32, #tpu.memory_space<vmem>>, vector<8x4xf32>,
    return
  }
  func.func @transform_0(%arg0: i32) -> (i32, i32) {
    %c0_i32 = arith.constant 0 : i32
    %c0_i32_0 = arith.constant 0 : i32
    return %arg0, %c0_i32 : i32, i32
  }
  func.func @transform_1(%arg0: i32) -> (i32, i32) {
    %c0_i32 = arith.constant 0 : i32
    %c0_i32_0 = arith.constant 0 : i32
    %c0_i32_1 = arith.constant 0 : i32
    return %c0_i32, %c0_i32_0 : i32, i32
  }
  func.func @transform_2(%arg0: i32) -> (i32, i32) {
    %c0_i32 = arith.constant 0 : i32
    %c0_i32_0 = arith.constant 0 : i32
    %c0_i32_1 = arith.constant 0 : i32
    return %c0_i32, %c0_i32_0 : i32, i32
  }
  func.func @transform_3(%arg0: i32) -> (i32, i32) {
    %c0_i32 = arith.constant 0 : i32
    %c0_i32_0 = arith.constant 0 : i32
    return %arg0, %c0_i32 : i32, i32
  }
}

</mosaic_0001>

<bundles_post_ra>
// kernel: tpu_custom_call.1
= control target key start
LH: loop header
LB: loop body
LE: loop exit
PB: predicated region body
PF: predicated region fallthrough
CT: control target
= control target key end

     0   :  { %8 = vsyncpa [#allocation3], 0  ;;  %s4728_s0 = inlined_call_operand.hbm [shape: f32[16,20480], index: 0, kind: input, shape index: {}]   ;;  %s4729_s1 = inlined_call_operand.hbm [shape: f32[4,20480], index: 1, kind: input, shape index: {}]   ;;  %s4730_s2 = inlined_call_operand.hbm [shape: f32[1,4], index: 2, kind: input, shape index: {}]   ;;  %s4731_s3 = inlined_call_operand.vmem [shape: f32[16,4], index: 3, kind: output, shape index: {}]  }
   0x1   :  { %10 = vsyncpa [#allocation3 + $0x1], 0 }
   0x2   :  { %11 = vsyncpa [#allocation5], 0  ;;  %s4460_s12 = smov 0   ;;  %s4462_s13 = smov 0  }
   0x3   :  { %s4464_s14 = smov 0   ;;  %s4466_s15 = smov 0  }
   0x4 LB: > { %s4479_s16 = sadd.s32 4294967295, %s4436_s15   ;;  %p37_p0 = scmp.ne.s32.totalorder %s4428_s13, %s4424_s12  ;;  %s4436_s15 = sphi %s4466_s15, %s4738_s15   ;;  %s4432_s14 = sphi %s4464_s14, %s4737_s14   ;;  %s4428_s13 = sphi %s4462_s13, %s4736_s13   ;;  %s4424_s12 = sphi %s4460_s12, %s4735_s12  }
   0x5   : > { %p38_p1 = scmp.eq.s32.totalorder %s4479_s16, 0  ;;  %p4233_p2 = scmp.ge.s32.totalorder %s4436_s15, 1 }
   0x6   : > { %p116_p3 = scmp.lt.s32.totalorder %s4436_s15, 3  ;;  %s128_s20 = sshll.u32 %s4729_s1, 4  ;;  %s129_s20 = int_to_ptr.hbm [resolvable:$true] %s128_s20 }
   0x7   : > { %p4487_p4 = por %p38_p1, %p37_p0  ;;  %s4438_s22 = smov [#allocation4]  }
   0x8   : > { %p4494_p5 = pnand %p4233_p2, %p116_p3  ;;  %s130_s23 = sshll.u32 %s4438_s22, 4  ;;  %s131_s23 = int_to_ptr.vmem [resolvable:$true] %s130_s23 }
   0x9   : > { %s140_s26 = sshll.u32 %s4730_s2, 4  ;;  %s4439_s27 = smov [#allocation6]   ;;  %s141_s26 = int_to_ptr.hbm [resolvable:$true] %s140_s26 }
   0xa   : > { %p4257_p6 = pneg %p4494_p5  ;;  %s142_s28 = sshll.u32 %s4439_s27, 4  ;;  %s143_s28 = int_to_ptr.vmem [resolvable:$true] %s142_s28 }
   0xb   : > { %s4506_s29 = sadd.s32 1, %s4436_s15   ;;  %s24_s30 = sadd.s32 1, %s4432_s14 }
   0xc   : > { %p4258_p7 = pnand %p4257_p6, %p38_p1  ;;  %s21_s4 = ssub.s32 %s4436_s15, %s4506_s29 }
   0xd   : > { %p31_p8 = scmp.ne.s32.totalorder %s4432_s14, %s4428_s13  ;;  %p22_p9 = scmp.eq.s32.totalorder %s21_s4, 0 }
   0xe   : > { %4260 = dma.hbm_to_vmem [thread:$0]  (!%p4258_p7), %s129_s20, 10240, %s131_s23, [#allocation5]  }
   0xf   : > { %4263 = dma.hbm_to_vmem [thread:$0]  (!%p4258_p7), %s141_s26, 16, %s143_s28, [#allocation5]  }
  0x10   : > { %p32_p10 = scmp.eq.s32.totalorder %s4436_s15, 0  ;;  %p4270_p11 = scmp.lt.s32.totalorder %s4436_s15, 2 }
  0x11   : > { %s153_s5 = sand.u32 1, %s4432_s14   ;;  %s4245_s8 = smul.u32 1280, %s4436_s15 }
  0x12   : > { %s4517_s6 = scalar_select %p22_p9, %s4432_s14, %s24_s30  }
  0x13   : > { %p33_p12 = por %p32_p10, %p31_p8  ;;  %s4244_s7 = smul.u32 1280, %s153_s5 }
  0x14   : > { %s162_s12 = scalar_lea.hbm %s4728_s0, %s4245_s8  ;;  %s154_s22 = scalar_lea.sflag [#allocation3], %s153_s5 }
  0x15   : > { %p4520_p13 = pnand %p4270_p11, %p33_p12  ;;  %s157_s18 = scalar_lea.vmem [#allocation2], %s4244_s7 }
  0x16   : > { %s166_s19 = sshll.u32 %s157_s18, 4  ;;  %s164_s20 = sshll.u32 %s162_s12, 4  ;;  %s167_s19 = int_to_ptr.vmem [resolvable:$true] %s166_s19  ;;  %s165_s20 = int_to_ptr.hbm [resolvable:$true] %s164_s20 }
  0x17   : > { %s4368_s23 = sshra.s32 %s165_s20, 4  ;;  %p4372_p2 = pneg %p4520_p13  ;;  %s4369_s23 = int_to_ptr.hbm [resolvable:$true] %s4368_s23 }
  0x18   : > { %s4370_s24 = scalar_lea.hbm %s4369_s23, 1280  ;;  %s4375_s26 = scalar_lea.hbm %s4728_s0, 2560 }
  0x19   : > { %p4371_p0 = scmp.ne.s32.totalorder %s4369_s23, %s4370_s24  ;;  %p4376_p7 = scmp.lt.s32.totalorder %s4369_s23, %s4728_s0 }
  0x1a   : > { %p4377_p8 = scmp.lt.s32.totalorder %s4375_s26, %s4370_s24 }
  0x1b   : > { %p4373_p3 = pnand %p4372_p2, %p4371_p0 }
  0x1c   : > { %p4378_p9 = por %p4377_p8, %p4376_p7 }
  0x1d   : > { %p4374_p6 = pneg %p4373_p3 }
  0x1f   : > { %p4379_p10 = pnand %p4378_p9, %p4374_p6 }
  0x21   : > { %4382 = shalt.err (!%p4379_p10)
}
  0x22   : > { %4267 = dma.hbm_to_vmem [thread:$0]  (!%p4520_p13), %s165_s20, 20480, %s167_s19, %s154_s22  }
  0x23   : > { %175 = sbr.rel (%p4494_p5) target bundleno = 506 (0x1fa), region = 32  ;;  %s177_s30 = sand.u32 (!%p4494_p5), 1, %s4428_s13  }
  0x24   : > { %s4246_s4 = smul.u32 (!%p4494_p5), 1280, %s177_s30  ;;  %s178_s5 = scalar_lea.sflag (!%p4494_p5), [#allocation3], %s177_s30 }
  0x26   : > { %s4540_s7 = scalar_lea.vmem (!%p4494_p5), [#allocation2], %s4246_s4 }
  0x28   : > { %4415 = dma.done.wait (%p4487_p4), %s178_s5, 20480  }
  0x29   : > { %4417 = vsyncadd (%p4487_p4), %s178_s5, 4294946816 }
  0x2a   : > { %4419 = dma.done.wait (%p38_p1), [#allocation5], 10256  }
  0x2b   : > { %4421 = vsyncadd (%p38_p1), [#allocation5], 4294957040  ;;  %v380_v0 = vld [vmem:[#allocation4 + $0x8] sm:$0xff]  ;;  %v379_v1 = vld [vmem:[#allocation4] sm:$0xff]  ;;  %p214_p1 = scmp.lt.s32.totalorder %s4479_s16, 1  ;;  %vm4146_vm0 = vcmask 31744  }
  0x2c   : > { %541 = vst [vmem:[#allocation1 + $0x10] ss:$2 sm:$0xff] %v380_v0  ;;  %v382_v2 = vld [vmem:[#allocation4 + $0x18] sm:$0xff]  ;;  %v381_v3 = vld [vmem:[#allocation4 + $0x10] sm:$0xff]  ;;  %v384_v6 = vld [vmem:[#allocation4 + $0x28] sm:$0xff] }
  0x2d   : > { %539 = vst [vmem:[#allocation1] ss:$2 sm:$0xff] %v379_v1  ;;  %v221_v4 = vld [vmem:[%s4540_s7 + $0x10] sm:$0xff]  ;;  %v222_v5 = vld [vmem:[%s4540_s7 + $0x18] sm:$0xff]  ;;  %v219_v9 = vld [vmem:[%s4540_s7] sm:$0xff]  ;;  %s4740_s16 = smov (!%p214_p1, %s4479_s16), 1 }
  0x2e   : > { %545 = vst [vmem:[#allocation1 + $0x30] ss:$2 sm:$0xff] %v382_v2  ;;  %v220_v10 = vld [vmem:[%s4540_s7 + $0x8] sm:$0xff]  ;;  %v383_v11 = vld [vmem:[#allocation4 + $0x20] sm:$0xff]  ;;  %v386_v14 = vld [vmem:[#allocation4 + $0x38] sm:$0xff]  ;;  %s4241_s17 = sshll.u32 %s4740_s16, 3 }
  0x2f   : > { %543 = vst [vmem:[#allocation1 + $0x20] ss:$2 sm:$0xff] %v381_v3  ;;  %v385_v19 = vld [vmem:[#allocation4 + $0x30] sm:$0xff]  ;;  %v226_v21 = vld [vmem:[%s4540_s7 + $0x38] sm:$0xff]  ;;  %v223_v22 = vld [vmem:[%s4540_s7 + $0x20] sm:$0xff]  ;;  %s217_s9 = scalar_lea.vmem %s4731_s3, %s4241_s17 }
  0x30   : > { %v225_v20 = vld [vmem:[%s4540_s7 + $0x30] sm:$0xff]  ;;  %v224_v23 = vld [vmem:[%s4540_s7 + $0x28] sm:$0xff]  ;;  %v387_v27 = vld [vmem:[#allocation4 + $0x40] sm:$0xff] }
  0x31   : > { %v388_v24 = vld [vmem:[#allocation4 + $0x48] sm:$0xff]  ;;  %v390_v30 = vld [vmem:[#allocation4 + $0x58] sm:$0xff]  ;;  %v389_v35 = vld [vmem:[#allocation4 + $0x50] sm:$0xff] }
  0x32   : > { %v229_v36 = vld [vmem:[%s4540_s7 + $0x50] sm:$0xff]  ;;  %v230_v37 = vld [vmem:[%s4540_s7 + $0x58] sm:$0xff]  ;;  %v227_v38 = vld [vmem:[%s4540_s7 + $0x40] sm:$0xff] }
  0x33   : > { %v548_v7 = vld.sshfl [vmem:[#allocation1 + $0x10] sm:$0xff pattern:$0x75316420]  ;;  %v549_v8 = vld.sshfl [vmem:[#allocation1 + $0x18] sm:$0xff pattern:$0x75316420] }
  0x34   : > { %997 = vmatpush.xpose.msra.mxu2 %v548_v7  ;;  %v546_v12 = vld.sshfl [vmem:[#allocation1] sm:$0xff pattern:$0x75316420]  ;;  %v547_v13 = vld.sshfl [vmem:[#allocation1 + $0x8] sm:$0xff pattern:$0x75316420]  ;;  %1017 = vmatpush.xpose.msra.mxu3 %v549_v8 }
  0x35   : > { %957 = vmatpush.xpose.msra.mxu0 %v546_v12  ;;  %977 = vmatpush.xpose.msra.mxu1 %v547_v13  ;;  %v552_v15 = vld.sshfl [vmem:[#allocation1 + $0x30] sm:$0xff pattern:$0x75316420]  ;;  %v553_v16 = vld.sshfl [vmem:[#allocation1 + $0x38] sm:$0xff pattern:$0x75316420] }
  0x36   : > { %v550_v17 = vld.sshfl [vmem:[#allocation1 + $0x20] sm:$0xff pattern:$0x75316420]  ;;  %v551_v18 = vld.sshfl [vmem:[#allocation1 + $0x28] sm:$0xff pattern:$0x75316420] }
  0x37   : > { %998 = vmatmul.f32.vlgmr.msra.gmra.mxu2 %v221_v4  ;;  %1018 = vmatmul.f32.vlgmr.msra.gmra.mxu3 %v222_v5  ;;  %555 = vst [vmem:[#allocation1 + $0x10] ss:$2 sm:$0xff] %v384_v6  ;;  %v228_v39 = vld [vmem:[%s4540_s7 + $0x48] sm:$0xff]  ;;  %v233_v45 = vld [vmem:[%s4540_s7 + $0x70] sm:$0xff]  ;;  %v231_v46 = vld [vmem:[%s4540_s7 + $0x60] sm:$0xff] }
  0x38   : > { %1077 = vmatpush.xpose.msrb.mxu2 %v552_v15  ;;  %1097 = vmatpush.xpose.msrb.mxu3 %v553_v16  ;;  %554 = vst [vmem:[#allocation1] ss:$2 sm:$0xff] %v383_v11  ;;  %v392_v40 = vld [vmem:[#allocation4 + $0x68] sm:$0xff]  ;;  %v391_v47 = vld [vmem:[#allocation4 + $0x60] sm:$0xff]  ;;  %v234_v48 = vld [vmem:[%s4540_s7 + $0x78] sm:$0xff] }
  0x39   : > { %958 = vmatmul.f32.vlgmr.msra.gmra.mxu0 %v219_v9  ;;  %978 = vmatmul.f32.vlgmr.msra.gmra.mxu1 %v220_v10  ;;  %557 = vst [vmem:[#allocation1 + $0x30] ss:$2 sm:$0xff] %v386_v14  ;;  %v394_v50 = vld [vmem:[#allocation4 + $0x78] sm:$0xff]  ;;  %v393_v52 = vld [vmem:[#allocation4 + $0x70] sm:$0xff]  ;;  %v232_v54 = vld [vmem:[%s4540_s7 + $0x68] sm:$0xff] }
  0x3a   : > { %1037 = vmatpush.xpose.msrb.mxu0 %v550_v17  ;;  %1057 = vmatpush.xpose.msrb.mxu1 %v551_v18  ;;  %556 = vst [vmem:[#allocation1 + $0x20] ss:$2 sm:$0xff] %v385_v19  ;;  %v237_v56 = vld [vmem:[%s4540_s7 + $0x90] sm:$0xff]  ;;  %v235_v57 = vld [vmem:[%s4540_s7 + $0x80] sm:$0xff]  ;;  %v238_v58 = vld [vmem:[%s4540_s7 + $0x98] sm:$0xff] }
  0x3b   : > { %v396_v59 = vld [vmem:[#allocation4 + $0x88] sm:$0xff]  ;;  %v395_v62 = vld [vmem:[#allocation4 + $0x80] sm:$0xff]  ;;  %v398_v63 = vld [vmem:[#allocation4 + $0x98] sm:$0xff] }
  0x3c   : > { %v236_v60 = vld [vmem:[%s4540_s7 + $0x88] sm:$0xff]  ;;  %v397_v5 = vld [vmem:[#allocation4 + $0x90] sm:$0xff]  ;;  %v242_v9 = vld [vmem:[%s4540_s7 + $0xb8] sm:$0xff] }
  0x3d   : > { %v241_v8 = vld [vmem:[%s4540_s7 + $0xb0] sm:$0xff]  ;;  %v239_v10 = vld [vmem:[%s4540_s7 + $0xa0] sm:$0xff]  ;;  %v240_v11 = vld [vmem:[%s4540_s7 + $0xa8] sm:$0xff] }
  0x3e   : > { %v560_v25 = vld.sshfl [vmem:[#allocation1 + $0x10] sm:$0xff pattern:$0x75316420]  ;;  %v561_v26 = vld.sshfl [vmem:[#allocation1 + $0x18] sm:$0xff pattern:$0x75316420] }
  0x3f   : > { %1078 = vmatmul.f32.vlgmr.msrb.gmra.mxu2 %v225_v20  ;;  %1098 = vmatmul.f32.vlgmr.msrb.gmra.mxu3 %v226_v21  ;;  %v558_v28 = vld.sshfl [vmem:[#allocation1] sm:$0xff pattern:$0x75316420]  ;;  %v559_v29 = vld.sshfl [vmem:[#allocation1 + $0x8] sm:$0xff pattern:$0x75316420] }
  0x40   : > { %1157 = vmatpush.xpose.msra.mxu2 %v560_v25  ;;  %v564_v31 = vld.sshfl [vmem:[#allocation1 + $0x30] sm:$0xff pattern:$0x75316420]  ;;  %v565_v32 = vld.sshfl [vmem:[#allocation1 + $0x38] sm:$0xff pattern:$0x75316420]  ;;  %1117 = vmatpush.xpose.msra.mxu0 %v558_v28 }
  0x41   : > { %1038 = vmatmul.f32.vlgmr.msrb.gmra.mxu0 %v223_v22  ;;  %1177 = vmatpush.xpose.msra.mxu3 %v561_v26  ;;  %v562_v33 = vld.sshfl [vmem:[#allocation1 + $0x20] sm:$0xff pattern:$0x75316420]  ;;  %v563_v34 = vld.sshfl [vmem:[#allocation1 + $0x28] sm:$0xff pattern:$0x75316420] }
  0x42   : > { %1058 = vmatmul.f32.vlgmr.msrb.gmra.mxu1 %v224_v23  ;;  %567 = vst [vmem:[#allocation1 + $0x10] ss:$2 sm:$0xff] %v388_v24  ;;  %v400_v13 = vld [vmem:[#allocation4 + $0xa8] sm:$0xff]  ;;  %v399_v14 = vld [vmem:[#allocation4 + $0xa0] sm:$0xff]  ;;  %v245_v17 = vld [vmem:[%s4540_s7 + $0xd0] sm:$0xff] }
  0x43   : > { %1137 = vmatpush.xpose.msra.mxu1 %v559_v29  ;;  %566 = vst [vmem:[#allocation1] ss:$2 sm:$0xff] %v387_v27  ;;  %v243_v20 = vld [vmem:[%s4540_s7 + $0xc0] sm:$0xff]  ;;  %v246_v21 = vld [vmem:[%s4540_s7 + $0xd8] sm:$0xff]  ;;  %v401_v26 = vld [vmem:[#allocation4 + $0xb0] sm:$0xff] }
  0x44   : > { %1237 = vmatpush.xpose.msrb.mxu2 %v564_v31  ;;  %1197 = vmatpush.xpose.msrb.mxu0 %v562_v33  ;;  %569 = vst [vmem:[#allocation1 + $0x30] ss:$2 sm:$0xff] %v390_v30  ;;  %v402_v24 = vld [vmem:[#allocation4 + $0xb8] sm:$0xff]  ;;  %v244_v27 = vld [vmem:[%s4540_s7 + $0xc8] sm:$0xff]  ;;  %v249_v28 = vld [vmem:[%s4540_s7 + $0xf0] sm:$0xff] }
  0x45   : > { %1257 = vmatpush.xpose.msrb.mxu3 %v565_v32  ;;  %568 = vst [vmem:[#allocation1 + $0x20] ss:$2 sm:$0xff] %v389_v35  ;;  %v247_v29 = vld [vmem:[%s4540_s7 + $0xe0] sm:$0xff]  ;;  %v250_v30 = vld [vmem:[%s4540_s7 + $0xf8] sm:$0xff] }
  0x46   : > { %v403_v35 = vld [vmem:[#allocation4 + $0xc0] sm:$0xff] }
  0x47   : > { %1217 = vmatpush.xpose.msrb.mxu1 %v563_v34  ;;  %1158 = vmatmul.f32.vlgmr.msra.gmra.mxu2 %v229_v36  ;;  %v404_v34 = vld [vmem:[#allocation4 + $0xc8] sm:$0xff] }
  0x48   : > { %1178 = vmatmul.f32.vlgmr.msra.gmra.mxu3 %v230_v37  ;;  %v248_v36 = vld [vmem:[%s4540_s7 + $0xe8] sm:$0xff] }
  0x49   : > { %1118 = vmatmul.f32.vlgmr.msra.gmra.mxu0 %v227_v38  ;;  %v572_v41 = vld.sshfl [vmem:[#allocation1 + $0x10] sm:$0xff pattern:$0x75316420]  ;;  %v573_v42 = vld.sshfl [vmem:[#allocation1 + $0x18] sm:$0xff pattern:$0x75316420] }
  0x4a   : > { %1138 = vmatmul.f32.vlgmr.msra.gmra.mxu1 %v228_v39  ;;  %1317 = vmatpush.xpose.msra.mxu2 %v572_v41  ;;  %v570_v43 = vld.sshfl [vmem:[#allocation1] sm:$0xff pattern:$0x75316420]  ;;  %v571_v44 = vld.sshfl [vmem:[#allocation1 + $0x8] sm:$0xff pattern:$0x75316420] }
  0x4b   : > { %1277 = vmatpush.xpose.msra.mxu0 %v570_v43  ;;  %1337 = vmatpush.xpose.msra.mxu3 %v573_v42  ;;  %v576_v49 = vld.sshfl [vmem:[#allocation1 + $0x30] sm:$0xff pattern:$0x75316420]  ;;  %v577_v51 = vld.sshfl [vmem:[#allocation1 + $0x38] sm:$0xff pattern:$0x75316420] }
  0x4c   : > { %1297 = vmatpush.xpose.msra.mxu1 %v571_v44  ;;  %579 = vst [vmem:[#allocation1 + $0x10] ss:$2 sm:$0xff] %v392_v40  ;;  %v574_v53 = vld.sshfl [vmem:[#allocation1 + $0x20] sm:$0xff pattern:$0x75316420]  ;;  %v253_v41 = vld [vmem:[%s4540_s7 + $0x110] sm:$0xff] }
  0x4d   : > { %578 = vst [vmem:[#allocation1] ss:$2 sm:$0xff] %v391_v47  ;;  %v575_v55 = vld.sshfl [vmem:[#allocation1 + $0x28] sm:$0xff pattern:$0x75316420]  ;;  %v406_v40 = vld [vmem:[#allocation4 + $0xd8] sm:$0xff] }
  0x4e   : > { %581 = vst [vmem:[#allocation1 + $0x30] ss:$2 sm:$0xff] %v394_v50  ;;  %v254_v42 = vld [vmem:[%s4540_s7 + $0x118] sm:$0xff]  ;;  %v251_v43 = vld [vmem:[%s4540_s7 + $0x100] sm:$0xff]  ;;  %v405_v44 = vld [vmem:[#allocation4 + $0xd0] sm:$0xff] }
  0x4f   : > { %1238 = vmatmul.f32.vlgmr.msrb.gmra.mxu2 %v233_v45  ;;  %580 = vst [vmem:[#allocation1 + $0x20] ss:$2 sm:$0xff] %v393_v52  ;;  %v252_v45 = vld [vmem:[%s4540_s7 + $0x108] sm:$0xff]  ;;  %v258_v52 = vld [vmem:[%s4540_s7 + $0x138] sm:$0xff] }
  0x50   : > { %1258 = vmatmul.f32.vlgmr.msrb.gmra.mxu3 %v234_v48  ;;  %1397 = vmatpush.xpose.msrb.mxu2 %v576_v49  ;;  %v257_v48 = vld [vmem:[%s4540_s7 + $0x130] sm:$0xff]  ;;  %v255_v49 = vld [vmem:[%s4540_s7 + $0x120] sm:$0xff] }
  0x51   : > { %1198 = vmatmul.f32.vlgmr.msrb.gmra.mxu0 %v231_v46  ;;  %1417 = vmatpush.xpose.msrb.mxu3 %v577_v51 }
  0x52   : > { %1357 = vmatpush.xpose.msrb.mxu0 %v574_v53  ;;  %1218 = vmatmul.f32.vlgmr.msrb.gmra.mxu1 %v232_v54  ;;  %v408_v54 = vld [vmem:[#allocation4 + $0xe8] sm:$0xff] }
  0x53   : > { %1377 = vmatpush.xpose.msrb.mxu1 %v575_v55  ;;  %v584_v61 = vld.sshfl [vmem:[#allocation1 + $0x10] sm:$0xff pattern:$0x75316420]  ;;  %v585_v1 = vld.sshfl [vmem:[#allocation1 + $0x18] sm:$0xff pattern:$0x75316420] }
  0x54   : > { %v582_v0 = vld.sshfl [vmem:[#allocation1] sm:$0xff pattern:$0x75316420]  ;;  %v583_v2 = vld.sshfl [vmem:[#allocation1 + $0x8] sm:$0xff pattern:$0x75316420] }
  0x55   : > { %v588_v3 = vld.sshfl [vmem:[#allocation1 + $0x30] sm:$0xff pattern:$0x75316420]  ;;  %v589_v4 = vld.sshfl [vmem:[#allocation1 + $0x38] sm:$0xff pattern:$0x75316420] }
  0x56   : > { %591 = vst [vmem:[#allocation1 + $0x10] ss:$2 sm:$0xff] %v396_v59  ;;  %v586_v6 = vld.sshfl [vmem:[#allocation1 + $0x20] sm:$0xff pattern:$0x75316420] }
  0x57   : > { %1318 = vmatmul.f32.vlgmr.msra.gmra.mxu2 %v237_v56  ;;  %590 = vst [vmem:[#allocation1] ss:$2 sm:$0xff] %v395_v62  ;;  %v587_v7 = vld.sshfl [vmem:[#allocation1 + $0x28] sm:$0xff pattern:$0x75316420]  ;;  %v410_v59 = vld [vmem:[#allocation4 + $0xf8] sm:$0xff] }
  0x58   : > { %1338 = vmatmul.f32.vlgmr.msra.gmra.mxu3 %v238_v58  ;;  %1477 = vmatpush.xpose.msra.mxu2 %v584_v61  ;;  %593 = vst [vmem:[#allocation1 + $0x30] ss:$2 sm:$0xff] %v398_v63  ;;  %v407_v56 = vld [vmem:[#allocation4 + $0xe0] sm:$0xff]  ;;  %v261_v58 = vld [vmem:[%s4540_s7 + $0x150] sm:$0xff]  ;;  %v262_v61 = vld [vmem:[%s4540_s7 + $0x158] sm:$0xff] }
  0x59   : > { %1278 = vmatmul.f32.vlgmr.msra.gmra.mxu0 %v235_v57  ;;  %1497 = vmatpush.xpose.msra.mxu3 %v585_v1  ;;  %592 = vst [vmem:[#allocation1 + $0x20] ss:$2 sm:$0xff] %v397_v5  ;;  %v256_v57 = vld [vmem:[%s4540_s7 + $0x128] sm:$0xff] }
  0x5a   : > { %1437 = vmatpush.xpose.msra.mxu0 %v582_v0  ;;  %1298 = vmatmul.f32.vlgmr.msra.gmra.mxu1 %v236_v60  ;;  %v259_v60 = vld [vmem:[%s4540_s7 + $0x140] sm:$0xff] }
  0x5b   : > { %1457 = vmatpush.xpose.msra.mxu1 %v583_v2  ;;  %v409_v2 = vld [vmem:[#allocation4 + $0xf0] sm:$0xff] }
  0x5d   : > { %v596_v12 = vld.sshfl [vmem:[#allocation1 + $0x10] sm:$0xff pattern:$0x75316420]  ;;  %v597_v16 = vld.sshfl [vmem:[#allocation1 + $0x18] sm:$0xff pattern:$0x75316420] }
  0x5e   : > { %v594_v15 = vld.sshfl [vmem:[#allocation1] sm:$0xff pattern:$0x75316420]  ;;  %v595_v18 = vld.sshfl [vmem:[#allocation1 + $0x8] sm:$0xff pattern:$0x75316420] }
  0x5f   : > { %1398 = vmatmul.f32.vlgmr.msrb.gmra.mxu2 %v241_v8  ;;  %v600_v19 = vld.sshfl [vmem:[#allocation1 + $0x30] sm:$0xff pattern:$0x75316420]  ;;  %v601_v22 = vld.sshfl [vmem:[#allocation1 + $0x38] sm:$0xff pattern:$0x75316420] }
  0x60   : > { %1418 = vmatmul.f32.vlgmr.msrb.gmra.mxu3 %v242_v9  ;;  %1557 = vmatpush.xpose.msrb.mxu2 %v588_v3  ;;  %603 = vst [vmem:[#allocation1 + $0x10] ss:$2 sm:$0xff] %v400_v13  ;;  %v598_v23 = vld.sshfl [vmem:[#allocation1 + $0x20] sm:$0xff pattern:$0x75316420]  ;;  %v260_v3 = vld [vmem:[%s4540_s7 + $0x148] sm:$0xff] }
  0x61   : > { %1358 = vmatmul.f32.vlgmr.msrb.gmra.mxu0 %v239_v10  ;;  %1577 = vmatpush.xpose.msrb.mxu3 %v589_v4  ;;  %602 = vst [vmem:[#allocation1] ss:$2 sm:$0xff] %v399_v14  ;;  %v599_v25 = vld.sshfl [vmem:[#allocation1 + $0x28] sm:$0xff pattern:$0x75316420]  ;;  %v266_v8 = vld [vmem:[%s4540_s7 + $0x178] sm:$0xff] }
  0x62   : > { %1517 = vmatpush.xpose.msrb.mxu0 %v586_v6  ;;  %1378 = vmatmul.f32.vlgmr.msrb.gmra.mxu1 %v240_v11  ;;  %605 = vst [vmem:[#allocation1 + $0x30] ss:$2 sm:$0xff] %v402_v24  ;;  %v412_v6 = vld [vmem:[#allocation4 + $0x108] sm:$0xff]  ;;  %v263_v9 = vld [vmem:[%s4540_s7 + $0x160] sm:$0xff]  ;;  %v269_v14 = vld [vmem:[%s4540_s7 + $0x190] sm:$0xff] }
  0x63   : > { %1537 = vmatpush.xpose.msrb.mxu1 %v587_v7  ;;  %604 = vst [vmem:[#allocation1 + $0x20] ss:$2 sm:$0xff] %v401_v26  ;;  %v265_v7 = vld [vmem:[%s4540_s7 + $0x170] sm:$0xff]  ;;  %v264_v11 = vld [vmem:[%s4540_s7 + $0x168] sm:$0xff]  ;;  %v411_v13 = vld [vmem:[#allocation4 + $0x100] sm:$0xff] }
  0x64   : > { %v273_v24 = vld [vmem:[%s4540_s7 + $0x1b0] sm:$0xff]  ;;  %v271_v26 = vld [vmem:[%s4540_s7 + $0x1a0] sm:$0xff] }
  0x67   : > { %1478 = vmatmul.f32.vlgmr.msra.gmra.mxu2 %v245_v17  ;;  %v608_v31 = vld.sshfl [vmem:[#allocation1 + $0x10] sm:$0xff pattern:$0x75316420]  ;;  %v609_v32 = vld.sshfl [vmem:[#allocation1 + $0x18] sm:$0xff pattern:$0x75316420] }
  0x68   : > { %1498 = vmatmul.f32.vlgmr.msra.gmra.mxu3 %v246_v21  ;;  %1637 = vmatpush.xpose.msra.mxu2 %v596_v12  ;;  %v606_v33 = vld.sshfl [vmem:[#allocation1] sm:$0xff pattern:$0x75316420]  ;;  %v607_v37 = vld.sshfl [vmem:[#allocation1 + $0x8] sm:$0xff pattern:$0x75316420] }
  0x69   : > { %1438 = vmatmul.f32.vlgmr.msra.gmra.mxu0 %v243_v20  ;;  %1657 = vmatpush.xpose.msra.mxu3 %v597_v16  ;;  %615 = vst [vmem:[#allocation1 + $0x10] ss:$2 sm:$0xff] %v404_v34  ;;  %v612_v38 = vld.sshfl [vmem:[#allocation1 + $0x30] sm:$0xff pattern:$0x75316420]  ;;  %v414_v20 = vld [vmem:[#allocation4 + $0x118] sm:$0xff] }
  0x6a   : > { %1597 = vmatpush.xpose.msra.mxu0 %v594_v15  ;;  %1458 = vmatmul.f32.vlgmr.msra.gmra.mxu1 %v244_v27  ;;  %614 = vst [vmem:[#allocation1] ss:$2 sm:$0xff] %v403_v35  ;;  %v613_v39 = vld.sshfl [vmem:[#allocation1 + $0x38] sm:$0xff pattern:$0x75316420]  ;;  %v267_v15 = vld [vmem:[%s4540_s7 + $0x180] sm:$0xff] }
  0x6b   : > { %1617 = vmatpush.xpose.msra.mxu1 %v595_v18  ;;  %617 = vst [vmem:[#allocation1 + $0x30] ss:$2 sm:$0xff] %v406_v40  ;;  %v610_v46 = vld.sshfl [vmem:[#allocation1 + $0x20] sm:$0xff pattern:$0x75316420] }
  0x6c   : > { %v611_v47 = vld.sshfl [vmem:[#allocation1 + $0x28] sm:$0xff pattern:$0x75316420]  ;;  %v270_v18 = vld [vmem:[%s4540_s7 + $0x198] sm:$0xff] }
  0x6d   : > { %616 = vst [vmem:[#allocation1 + $0x20] ss:$2 sm:$0xff] %v405_v44  ;;  %v274_v27 = vld [vmem:[%s4540_s7 + $0x1b8] sm:$0xff]  ;;  %v281_v44 = vld [vmem:[%s4540_s7 + $0x1f0] sm:$0xff] }
  0x6f   : > { %1558 = vmatmul.f32.vlgmr.msrb.gmra.mxu2 %v249_v28 }
  0x70   : > { %1578 = vmatmul.f32.vlgmr.msrb.gmra.mxu3 %v250_v30  ;;  %1717 = vmatpush.xpose.msrb.mxu2 %v600_v19  ;;  %v620_v50 = vld.sshfl [vmem:[#allocation1 + $0x10] sm:$0xff pattern:$0x75316420]  ;;  %v621_v51 = vld.sshfl [vmem:[#allocation1 + $0x18] sm:$0xff pattern:$0x75316420] }
  0x71   : > { %1518 = vmatmul.f32.vlgmr.msrb.gmra.mxu0 %v247_v29  ;;  %1737 = vmatpush.xpose.msrb.mxu3 %v601_v22  ;;  %v618_v53 = vld.sshfl [vmem:[#allocation1] sm:$0xff pattern:$0x75316420]  ;;  %v619_v55 = vld.sshfl [vmem:[#allocation1 + $0x8] sm:$0xff pattern:$0x75316420] }
  0x72   : > { %1677 = vmatpush.xpose.msrb.mxu0 %v598_v23  ;;  %1538 = vmatmul.f32.vlgmr.msrb.gmra.mxu1 %v248_v36  ;;  %627 = vst [vmem:[#allocation1 + $0x10] ss:$2 sm:$0xff] %v408_v54  ;;  %v624_v62 = vld.sshfl [vmem:[#allocation1 + $0x30] sm:$0xff pattern:$0x75316420]  ;;  %v413_v22 = vld [vmem:[#allocation4 + $0x110] sm:$0xff] }
  0x73   : > { %1697 = vmatpush.xpose.msrb.mxu1 %v599_v25  ;;  %626 = vst [vmem:[#allocation1] ss:$2 sm:$0xff] %v407_v56  ;;  %v625_v0 = vld.sshfl [vmem:[#allocation1 + $0x38] sm:$0xff pattern:$0x75316420]  ;;  %v268_v23 = vld [vmem:[%s4540_s7 + $0x188] sm:$0xff] }
  0x74   : > { %v622_v63 = vld.sshfl [vmem:[#allocation1 + $0x20] sm:$0xff pattern:$0x75316420]  ;;  %v623_v1 = vld.sshfl [vmem:[#allocation1 + $0x28] sm:$0xff pattern:$0x75316420] }
  0x75   : > { %629 = vst [vmem:[#allocation1 + $0x30] ss:$2 sm:$0xff] %v410_v59  ;;  %v416_v25 = vld [vmem:[#allocation4 + $0x128] sm:$0xff]  ;;  %v418_v36 = vld [vmem:[#allocation4 + $0x138] sm:$0xff]  ;;  %v285_v54 = vld [vmem:[%s4540_s7 + $0x210] sm:$0xff] }
  0x76   : > { %628 = vst [vmem:[#allocation1 + $0x20] ss:$2 sm:$0xff] %v409_v2  ;;  %v283_v56 = vld [vmem:[%s4540_s7 + $0x200] sm:$0xff] }
  0x77   : > { %1638 = vmatmul.f32.vlgmr.msra.gmra.mxu2 %v253_v41  ;;  %v276_v41 = vld [vmem:[%s4540_s7 + $0x1c8] sm:$0xff] }
  0x78   : > { %1658 = vmatmul.f32.vlgmr.msra.gmra.mxu3 %v254_v42  ;;  %1797 = vmatpush.xpose.msra.mxu2 %v608_v31 }
  0x79   : > { %1598 = vmatmul.f32.vlgmr.msra.gmra.mxu0 %v251_v43  ;;  %1817 = vmatpush.xpose.msra.mxu3 %v609_v32  ;;  %v632_v4 = vld.sshfl [vmem:[#allocation1 + $0x10] sm:$0xff pattern:$0x75316420]  ;;  %v633_v5 = vld.sshfl [vmem:[#allocation1 + $0x18] sm:$0xff pattern:$0x75316420] }
  0x7a   : > { %1757 = vmatpush.xpose.msra.mxu0 %v606_v33  ;;  %1618 = vmatmul.f32.vlgmr.msra.gmra.mxu1 %v252_v45  ;;  %639 = vst [vmem:[#allocation1 + $0x10] ss:$2 sm:$0xff] %v412_v6  ;;  %v630_v10 = vld.sshfl [vmem:[#allocation1] sm:$0xff pattern:$0x75316420]  ;;  %v415_v32 = vld [vmem:[#allocation4 + $0x120] sm:$0xff] }
  0x7b   : > { %1777 = vmatpush.xpose.msra.mxu1 %v607_v37  ;;  %v631_v12 = vld.sshfl [vmem:[#allocation1 + $0x8] sm:$0xff pattern:$0x75316420]  ;;  %v272_v33 = vld [vmem:[%s4540_s7 + $0x1a8] sm:$0xff]  ;;  %v277_v37 = vld [vmem:[%s4540_s7 + $0x1d0] sm:$0xff] }
  0x7c   : > { %638 = vst [vmem:[#allocation1] ss:$2 sm:$0xff] %v411_v13  ;;  %v636_v16 = vld.sshfl [vmem:[#allocation1 + $0x30] sm:$0xff pattern:$0x75316420]  ;;  %v417_v43 = vld [vmem:[#allocation4 + $0x130] sm:$0xff] }
  0x7d   : > { %v637_v17 = vld.sshfl [vmem:[#allocation1 + $0x38] sm:$0xff pattern:$0x75316420]  ;;  %v634_v19 = vld.sshfl [vmem:[#allocation1 + $0x20] sm:$0xff pattern:$0x75316420] }
  0x7e   : > { %v635_v21 = vld.sshfl [vmem:[#allocation1 + $0x28] sm:$0xff pattern:$0x75316420]  ;;  %641 = vst [vmem:[#allocation1 + $0x30] ss:$2 sm:$0xff] %v414_v20 }
  0x7f   : > { %1718 = vmatmul.f32.vlgmr.msrb.gmra.mxu2 %v257_v48  ;;  %640 = vst [vmem:[#allocation1 + $0x20] ss:$2 sm:$0xff] %v413_v22  ;;  %v279_v45 = vld [vmem:[%s4540_s7 + $0x1e0] sm:$0xff]  ;;  %v282_v48 = vld [vmem:[%s4540_s7 + $0x1f8] sm:$0xff] }
  0x80   : > { %1738 = vmatmul.f32.vlgmr.msrb.gmra.mxu3 %v258_v52  ;;  %1877 = vmatpush.xpose.msrb.mxu2 %v612_v38  ;;  %v278_v38 = vld [vmem:[%s4540_s7 + $0x1d8] sm:$0xff]  ;;  %v419_v52 = vld [vmem:[#allocation4 + $0x140] sm:$0xff] }
  0x81   : > { %1678 = vmatmul.f32.vlgmr.msrb.gmra.mxu0 %v255_v49  ;;  %1897 = vmatpush.xpose.msrb.mxu3 %v613_v39  ;;  %v644_v28 = vld.sshfl [vmem:[#allocation1 + $0x10] sm:$0xff pattern:$0x75316420]  ;;  %v645_v30 = vld.sshfl [vmem:[#allocation1 + $0x18] sm:$0xff pattern:$0x75316420] }
  0x82   : > { %1837 = vmatpush.xpose.msrb.mxu0 %v610_v46  ;;  %1698 = vmatmul.f32.vlgmr.msrb.gmra.mxu1 %v256_v57  ;;  %651 = vst [vmem:[#allocation1 + $0x10] ss:$2 sm:$0xff] %v416_v25  ;;  %v275_v39 = vld [vmem:[%s4540_s7 + $0x1c0] sm:$0xff]  ;;  %v286_v57 = vld [vmem:[%s4540_s7 + $0x218] sm:$0xff] }
  0x83   : > { %1857 = vmatpush.xpose.msrb.mxu1 %v611_v47  ;;  %v642_v29 = vld.sshfl [vmem:[#allocation1] sm:$0xff pattern:$0x75316420]  ;;  %v643_v31 = vld.sshfl [vmem:[#allocation1 + $0x8] sm:$0xff pattern:$0x75316420] }
  0x84   : > { %650 = vst [vmem:[#allocation1] ss:$2 sm:$0xff] %v415_v32  ;;  %v287_v13 = vld [vmem:[%s4540_s7 + $0x220] sm:$0xff] }
  0x85   : > { %v648_v34 = vld.sshfl [vmem:[#allocation1 + $0x30] sm:$0xff pattern:$0x75316420]  ;;  %v649_v35 = vld.sshfl [vmem:[#allocation1 + $0x38] sm:$0xff pattern:$0x75316420] }
  0x86   : > { %653 = vst [vmem:[#allocation1 + $0x30] ss:$2 sm:$0xff] %v418_v36  ;;  %v646_v40 = vld.sshfl [vmem:[#allocation1 + $0x20] sm:$0xff pattern:$0x75316420]  ;;  %v291_v25 = vld [vmem:[%s4540_s7 + $0x240] sm:$0xff] }
  0x87   : > { %1798 = vmatmul.f32.vlgmr.msra.gmra.mxu2 %v261_v58  ;;  %v647_v42 = vld.sshfl [vmem:[#allocation1 + $0x28] sm:$0xff pattern:$0x75316420] }
  0x88   : > { %1818 = vmatmul.f32.vlgmr.msra.gmra.mxu3 %v262_v61  ;;  %1957 = vmatpush.xpose.msra.mxu2 %v620_v50  ;;  %652 = vst [vmem:[#allocation1 + $0x20] ss:$2 sm:$0xff] %v417_v43  ;;  %v420_v50 = vld [vmem:[#allocation4 + $0x148] sm:$0xff] }
  0x89   : > { %1758 = vmatmul.f32.vlgmr.msra.gmra.mxu0 %v259_v60  ;;  %1977 = vmatpush.xpose.msra.mxu3 %v621_v51  ;;  %v656_v46 = vld.sshfl [vmem:[#allocation1 + $0x10] sm:$0xff pattern:$0x75316420]  ;;  %v657_v47 = vld.sshfl [vmem:[#allocation1 + $0x18] sm:$0xff pattern:$0x75316420] }
  0x8a   : > { %1917 = vmatpush.xpose.msra.mxu0 %v618_v53  ;;  %1778 = vmatmul.f32.vlgmr.msra.gmra.mxu1 %v260_v3  ;;  %663 = vst [vmem:[#allocation1 + $0x10] ss:$2 sm:$0xff] %v420_v50  ;;  %v280_v53 = vld [vmem:[%s4540_s7 + $0x1e8] sm:$0xff] }
  0x8b   : > { %1937 = vmatpush.xpose.msra.mxu1 %v619_v55  ;;  %v654_v49 = vld.sshfl [vmem:[#allocation1] sm:$0xff pattern:$0x75316420]  ;;  %v655_v51 = vld.sshfl [vmem:[#allocation1 + $0x8] sm:$0xff pattern:$0x75316420] }
  0x8c   : > { %662 = vst [vmem:[#allocation1] ss:$2 sm:$0xff] %v419_v52  ;;  %v422_v55 = vld [vmem:[#allocation4 + $0x158] sm:$0xff]  ;;  %v428_v43 = vld [vmem:[#allocation4 + $0x188] sm:$0xff]  ;;  %v427_v52 = vld [vmem:[#allocation4 + $0x180] sm:$0xff] }
  0x8d   : > { %v660_v58 = vld.sshfl [vmem:[#allocation1 + $0x30] sm:$0xff pattern:$0x75316420]  ;;  %v661_v61 = vld.sshfl [vmem:[#allocation1 + $0x38] sm:$0xff pattern:$0x75316420] }
  0x8e   : > { %665 = vst [vmem:[#allocation1 + $0x30] ss:$2 sm:$0xff] %v422_v55  ;;  %v296_v55 = vld [vmem:[%s4540_s7 + $0x268] sm:$0xff] }
  0x8f   : > { %1878 = vmatmul.f32.vlgmr.msrb.gmra.mxu2 %v265_v7  ;;  %v658_v60 = vld.sshfl [vmem:[#allocation1 + $0x20] sm:$0xff pattern:$0x75316420] }
  0x90   : > { %1898 = vmatmul.f32.vlgmr.msrb.gmra.mxu3 %v266_v8  ;;  %2037 = vmatpush.xpose.msrb.mxu2 %v624_v62  ;;  %v424_v8 = vld [vmem:[#allocation4 + $0x168] sm:$0xff] }
  0x91   : > { %1838 = vmatmul.f32.vlgmr.msrb.gmra.mxu0 %v263_v9  ;;  %2057 = vmatpush.xpose.msrb.mxu3 %v625_v0  ;;  %v421_v0 = vld [vmem:[#allocation4 + $0x150] sm:$0xff] }
  0x92   : > { %1997 = vmatpush.xpose.msrb.mxu0 %v622_v63  ;;  %1858 = vmatmul.f32.vlgmr.msrb.gmra.mxu1 %v264_v11  ;;  %v659_v63 = vld.sshfl [vmem:[#allocation1 + $0x28] sm:$0xff pattern:$0x75316420]  ;;  %v669_v7 = vld.sshfl [vmem:[#allocation1 + $0x18] sm:$0xff pattern:$0x75316420] }
  0x93   : > { %2017 = vmatpush.xpose.msrb.mxu1 %v623_v1  ;;  %v284_v1 = vld [vmem:[%s4540_s7 + $0x208] sm:$0xff]  ;;  %664 = vst [vmem:[#allocation1 + $0x20] ss:$2 sm:$0xff] %v421_v0  ;;  %v289_v9 = vld [vmem:[%s4540_s7 + $0x230] sm:$0xff]  ;;  %v302_v0 = vld [vmem:[%s4540_s7 + $0x298] sm:$0xff] }
  0x97   : > { %1958 = vmatmul.f32.vlgmr.msra.gmra.mxu2 %v269_v14  ;;  %v666_v14 = vld.sshfl [vmem:[#allocation1] sm:$0xff pattern:$0x75316420] }
  0x98   : > { %1978 = vmatmul.f32.vlgmr.msra.gmra.mxu3 %v270_v18  ;;  %2117 = vmatpush.xpose.msra.mxu2 %v632_v4  ;;  %v667_v18 = vld.sshfl [vmem:[#allocation1 + $0x8] sm:$0xff pattern:$0x75316420] }
  0x99   : > { %1918 = vmatmul.f32.vlgmr.msra.gmra.mxu0 %v267_v15  ;;  %2137 = vmatpush.xpose.msra.mxu3 %v633_v5  ;;  %v668_v5 = vld.sshfl [vmem:[#allocation1 + $0x10] sm:$0xff pattern:$0x75316420] }
  0x9a   : > { %2077 = vmatpush.xpose.msra.mxu0 %v630_v10  ;;  %1938 = vmatmul.f32.vlgmr.msra.gmra.mxu1 %v268_v23  ;;  %v290_v10 = vld [vmem:[%s4540_s7 + $0x238] sm:$0xff]  ;;  %675 = vst [vmem:[#allocation1 + $0x10] ss:$2 sm:$0xff] %v424_v8  ;;  %v293_v23 = vld [vmem:[%s4540_s7 + $0x250] sm:$0xff] }
  0x9b   : > { %2097 = vmatpush.xpose.msra.mxu1 %v631_v12 }
  0x9f   : > { %2038 = vmatmul.f32.vlgmr.msrb.gmra.mxu2 %v273_v24 }
  0xa0   : > { %2058 = vmatmul.f32.vlgmr.msrb.gmra.mxu3 %v274_v27  ;;  %2197 = vmatpush.xpose.msrb.mxu2 %v636_v16  ;;  %v673_v27 = vld.sshfl [vmem:[#allocation1 + $0x38] sm:$0xff pattern:$0x75316420] }
  0xa1   : > { %1998 = vmatmul.f32.vlgmr.msrb.gmra.mxu0 %v271_v26  ;;  %2217 = vmatpush.xpose.msrb.mxu3 %v637_v17  ;;  %v288_v17 = vld [vmem:[%s4540_s7 + $0x228] sm:$0xff]  ;;  %v681_v50 = vld.sshfl [vmem:[#allocation1 + $0x18] sm:$0xff pattern:$0x75316420] }
  0xa2   : > { %2157 = vmatpush.xpose.msrb.mxu0 %v634_v19  ;;  %2018 = vmatmul.f32.vlgmr.msrb.gmra.mxu1 %v272_v33  ;;  %v423_v19 = vld [vmem:[#allocation4 + $0x160] sm:$0xff]  ;;  %v672_v26 = vld.sshfl [vmem:[#allocation1 + $0x30] sm:$0xff pattern:$0x75316420] }
  0xa3   : > { %2177 = vmatpush.xpose.msrb.mxu1 %v635_v21  ;;  %674 = vst [vmem:[#allocation1] ss:$2 sm:$0xff] %v423_v19  ;;  %v671_v33 = vld.sshfl [vmem:[#allocation1 + $0x28] sm:$0xff pattern:$0x75316420] }
  0xa7   : > { %2118 = vmatmul.f32.vlgmr.msra.gmra.mxu2 %v277_v37  ;;  %v292_v37 = vld [vmem:[%s4540_s7 + $0x248] sm:$0xff] }
  0xa8   : > { %2138 = vmatmul.f32.vlgmr.msra.gmra.mxu3 %v278_v38  ;;  %2277 = vmatpush.xpose.msra.mxu2 %v644_v28  ;;  %v294_v28 = vld [vmem:[%s4540_s7 + $0x258] sm:$0xff] }
  0xa9   : > { %2078 = vmatmul.f32.vlgmr.msra.gmra.mxu0 %v275_v39  ;;  %2297 = vmatpush.xpose.msra.mxu3 %v645_v30  ;;  %v426_v30 = vld [vmem:[#allocation4 + $0x178] sm:$0xff] }
  0xaa   : > { %2237 = vmatpush.xpose.msra.mxu0 %v642_v29  ;;  %2098 = vmatmul.f32.vlgmr.msra.gmra.mxu1 %v276_v41  ;;  %v670_v29 = vld.sshfl [vmem:[#allocation1 + $0x20] sm:$0xff pattern:$0x75316420]  ;;  %677 = vst [vmem:[#allocation1 + $0x30] ss:$2 sm:$0xff] %v426_v30 }
  0xab   : > { %2257 = vmatpush.xpose.msra.mxu1 %v643_v31 }
  0xaf   : > { %2198 = vmatmul.f32.vlgmr.msrb.gmra.mxu2 %v281_v44  ;;  %v295_v44 = vld [vmem:[%s4540_s7 + $0x260] sm:$0xff] }
  0xb0   : > { %2218 = vmatmul.f32.vlgmr.msrb.gmra.mxu3 %v282_v48  ;;  %2357 = vmatpush.xpose.msrb.mxu2 %v648_v34  ;;  %v425_v34 = vld [vmem:[#allocation4 + $0x170] sm:$0xff] }
  0xb1   : > { %2158 = vmatmul.f32.vlgmr.msrb.gmra.mxu0 %v279_v45  ;;  %2377 = vmatpush.xpose.msrb.mxu3 %v649_v35  ;;  %676 = vst [vmem:[#allocation1 + $0x20] ss:$2 sm:$0xff] %v425_v34  ;;  %v298_v45 = vld [vmem:[%s4540_s7 + $0x278] sm:$0xff]  ;;  %v307_v34 = vld [vmem:[%s4540_s7 + $0x2c0] sm:$0xff] }
  0xb2   : > { %2317 = vmatpush.xpose.msrb.mxu0 %v646_v40  ;;  %2178 = vmatmul.f32.vlgmr.msrb.gmra.mxu1 %v280_v53 }
  0xb3   : > { %2337 = vmatpush.xpose.msrb.mxu1 %v647_v42  ;;  %v297_v42 = vld [vmem:[%s4540_s7 + $0x270] sm:$0xff] }
  0xb6   : > { %v959_v59 = vpop.f32.mrf.mxu0  ;;  %v979_v62 = vpop.f32.mrf.mxu1 }
  0xb7   : > { %2278 = vmatmul.f32.vlgmr.msra.gmra.mxu2 %v285_v54  ;;  %v980_v2 = vadd.f32 %v979_v62, %v959_v59  ;;  %v684_v59 = vld.sshfl [vmem:[#allocation1 + $0x30] sm:$0xff pattern:$0x75316420]  ;;  %v430_v62 = vld [vmem:[#allocation4 + $0x198] sm:$0xff] }
  0xb8   : > { %2298 = vmatmul.f32.vlgmr.msra.gmra.mxu3 %v286_v57  ;;  %2437 = vmatpush.xpose.msra.mxu2 %v656_v46  ;;  %v680_v46 = vld.sshfl [vmem:[#allocation1 + $0x10] sm:$0xff pattern:$0x75316420]  ;;  %v683_v8 = vld.sshfl [vmem:[#allocation1 + $0x28] sm:$0xff pattern:$0x75316420] }
  0xb9   : > { %2238 = vmatmul.f32.vlgmr.msra.gmra.mxu0 %v283_v56  ;;  %2457 = vmatpush.xpose.msra.mxu3 %v657_v47  ;;  %687 = vst [vmem:[#allocation1 + $0x10] ss:$2 sm:$0xff] %v428_v43 }
  0xba   : > { %2397 = vmatpush.xpose.msra.mxu0 %v654_v49  ;;  %v999_v3 = vpop.f32.mrf.mxu2  ;;  %2258 = vmatmul.f32.vlgmr.msra.gmra.mxu1 %v284_v1  ;;  %v1019_v4 = vpop.f32.mrf.mxu3  ;;  %v678_v49 = vld.sshfl [vmem:[#allocation1] sm:$0xff pattern:$0x75316420] }
  0xbb   : > { %v1000_v6 = vadd.f32 %v999_v3, %v980_v2  ;;  %2417 = vmatpush.xpose.msra.mxu1 %v655_v51  ;;  %v679_v51 = vld.sshfl [vmem:[#allocation1 + $0x8] sm:$0xff pattern:$0x75316420] }
  0xbc   : > { %686 = vst [vmem:[#allocation1] ss:$2 sm:$0xff] %v427_v52  ;;  %v299_v3 = vld [vmem:[%s4540_s7 + $0x280] sm:$0xff]  ;;  %v436_v52 = vld [vmem:[#allocation4 + $0x1c8] sm:$0xff] }
  0xbd   : > { %v1020_v11 = vadd.f32 %v1019_v4, %v1000_v6  ;;  %v682_v4 = vld.sshfl [vmem:[#allocation1 + $0x20] sm:$0xff pattern:$0x75316420] }
  0xbe   : > { %v1039_v12 = vpop.f32.mrf.mxu0 }
  0xbf   : > { %v1040_v15 = vadd.f32 %v1039_v12, %v1020_v11  ;;  %2358 = vmatmul.f32.vlgmr.msrb.gmra.mxu2 %v289_v9  ;;  %v1059_v16 = vpop.f32.mrf.mxu1  ;;  %v429_v9 = vld [vmem:[#allocation4 + $0x190] sm:$0xff] }
  0xc0   : > { %2378 = vmatmul.f32.vlgmr.msrb.gmra.mxu3 %v290_v10  ;;  %2517 = vmatpush.xpose.msrb.mxu2 %v660_v58  ;;  %688 = vst [vmem:[#allocation1 + $0x20] ss:$2 sm:$0xff] %v429_v9 }
  0xc1   : > { %2318 = vmatmul.f32.vlgmr.msrb.gmra.mxu0 %v287_v13  ;;  %v1060_v20 = vadd.f32 %v1059_v16, %v1040_v15  ;;  %2537 = vmatpush.xpose.msrb.mxu3 %v661_v61  ;;  %v685_v61 = vld.sshfl [vmem:[#allocation1 + $0x38] sm:$0xff pattern:$0x75316420]  ;;  %v303_v15 = vld [vmem:[%s4540_s7 + $0x2a0] sm:$0xff] }
  0xc2   : > { %2477 = vmatpush.xpose.msrb.mxu0 %v658_v60  ;;  %v1079_v21 = vpop.f32.mrf.mxu2  ;;  %2338 = vmatmul.f32.vlgmr.msrb.gmra.mxu1 %v288_v17  ;;  %v1099_v22 = vpop.f32.mrf.mxu3  ;;  %689 = vst [vmem:[#allocation1 + $0x30] ss:$2 sm:$0xff] %v430_v62  ;;  %v305_v13 = vld [vmem:[%s4540_s7 + $0x2b0] sm:$0xff]  ;;  %v692_v16 = vld.sshfl [vmem:[#allocation1 + $0x10] sm:$0xff pattern:$0x75316420] }
  0xc3   : > { %v1080_v24 = vadd.f32 %v1079_v21, %v1060_v20  ;;  %2497 = vmatpush.xpose.msrb.mxu1 %v659_v63  ;;  %v301_v63 = vld [vmem:[%s4540_s7 + $0x290] sm:$0xff]  ;;  %v690_v19 = vld.sshfl [vmem:[#allocation1] sm:$0xff pattern:$0x75316420]  ;;  %v432_v20 = vld [vmem:[#allocation4 + $0x1a8] sm:$0xff] }
  0xc4   : > { %v693_v17 = vld.sshfl [vmem:[#allocation1 + $0x18] sm:$0xff pattern:$0x75316420] }
  0xc5   : > { %v1100_v31 = vadd.f32 %v1099_v22, %v1080_v24  ;;  %699 = vst [vmem:[#allocation1 + $0x10] ss:$2 sm:$0xff] %v432_v20  ;;  %v431_v24 = vld [vmem:[#allocation4 + $0x1a0] sm:$0xff] }
  0xc6   : > { %v1119_v32 = vpop.f32.mrf.mxu0 }
  0xc7   : > { %v1120_v35 = vadd.f32 %v1119_v32, %v1100_v31  ;;  %2438 = vmatmul.f32.vlgmr.msra.gmra.mxu2 %v293_v23  ;;  %v1139_v36 = vpop.f32.mrf.mxu1  ;;  %v691_v23 = vld.sshfl [vmem:[#allocation1 + $0x8] sm:$0xff pattern:$0x75316420]  ;;  %v309_v32 = vld [vmem:[%s4540_s7 + $0x2d0] sm:$0xff] }
  0xc8   : > { %2458 = vmatmul.f32.vlgmr.msra.gmra.mxu3 %v294_v28  ;;  %2597 = vmatpush.xpose.msra.mxu2 %v668_v5  ;;  %698 = vst [vmem:[#allocation1] ss:$2 sm:$0xff] %v431_v24  ;;  %v319_v24 = vld [vmem:[%s4540_s7 + $0x320] sm:$0xff] }
  0xc9   : > { %2398 = vmatmul.f32.vlgmr.msra.gmra.mxu0 %v291_v25  ;;  %v1140_v38 = vadd.f32 %v1139_v36, %v1120_v35  ;;  %2617 = vmatpush.xpose.msra.mxu3 %v669_v7  ;;  %v300_v7 = vld [vmem:[%s4540_s7 + $0x288] sm:$0xff]  ;;  %v310_v35 = vld [vmem:[%s4540_s7 + $0x2d8] sm:$0xff] }
  0xca   : > { %2557 = vmatpush.xpose.msra.mxu0 %v666_v14  ;;  %v1159_v39 = vpop.f32.mrf.mxu2  ;;  %2418 = vmatmul.f32.vlgmr.msra.gmra.mxu1 %v292_v37  ;;  %v696_v36 = vld.sshfl [vmem:[#allocation1 + $0x30] sm:$0xff pattern:$0x75316420] }
  0xcb   : > { %v1179_v40 = vpop.f32.mrf.mxu3  ;;  %v1160_v41 = vadd.f32 %v1159_v39, %v1140_v38  ;;  %2577 = vmatpush.xpose.msra.mxu1 %v667_v18  ;;  %v306_v18 = vld [vmem:[%s4540_s7 + $0x2b8] sm:$0xff] }
  0xcc   : > { %v694_v39 = vld.sshfl [vmem:[#allocation1 + $0x20] sm:$0xff pattern:$0x75316420] }
  0xcd   : > { %v1180_v47 = vadd.f32 %v1179_v40, %v1160_v41  ;;  %v697_v40 = vld.sshfl [vmem:[#allocation1 + $0x38] sm:$0xff pattern:$0x75316420]  ;;  %v695_v41 = vld.sshfl [vmem:[#allocation1 + $0x28] sm:$0xff pattern:$0x75316420] }
  0xce   : > { %v1199_v48 = vpop.f32.mrf.mxu0 }
  0xcf   : > { %v1200_v53 = vadd.f32 %v1199_v48, %v1180_v47  ;;  %2518 = vmatmul.f32.vlgmr.msrb.gmra.mxu2 %v297_v42  ;;  %v1219_v54 = vpop.f32.mrf.mxu1  ;;  %v433_v42 = vld [vmem:[#allocation4 + $0x1b0] sm:$0xff]  ;;  %v703_v62 = vld.sshfl [vmem:[#allocation1 + $0x8] sm:$0xff pattern:$0x75316420] }
  0xd0   : > { %2538 = vmatmul.f32.vlgmr.msrb.gmra.mxu3 %v298_v45  ;;  %2677 = vmatpush.xpose.msrb.mxu2 %v672_v26  ;;  %v308_v45 = vld [vmem:[%s4540_s7 + $0x2c8] sm:$0xff]  ;;  %700 = vst [vmem:[#allocation1 + $0x20] ss:$2 sm:$0xff] %v433_v42  ;;  %v442_v42 = vld [vmem:[#allocation4 + $0x1f8] sm:$0xff] }
  0xd1   : > { %2478 = vmatmul.f32.vlgmr.msrb.gmra.mxu0 %v295_v44  ;;  %v1220_v56 = vadd.f32 %v1219_v54, %v1200_v53  ;;  %2697 = vmatpush.xpose.msrb.mxu3 %v673_v27  ;;  %v304_v27 = vld [vmem:[%s4540_s7 + $0x2a8] sm:$0xff]  ;;  %v313_v53 = vld [vmem:[%s4540_s7 + $0x2f0] sm:$0xff]  ;;  %v314_v54 = vld [vmem:[%s4540_s7 + $0x2f8] sm:$0xff] }
  0xd2   : > { %2637 = vmatpush.xpose.msrb.mxu0 %v670_v29  ;;  %v1239_v57 = vpop.f32.mrf.mxu2  ;;  %2498 = vmatmul.f32.vlgmr.msrb.gmra.mxu1 %v296_v55 }
  0xd3   : > { %v1259_v58 = vpop.f32.mrf.mxu3  ;;  %v1240_v60 = vadd.f32 %v1239_v57, %v1220_v56  ;;  %2657 = vmatpush.xpose.msrb.mxu1 %v671_v33  ;;  %v434_v33 = vld [vmem:[#allocation4 + $0x1b8] sm:$0xff]  ;;  %v311_v57 = vld [vmem:[%s4540_s7 + $0x2e0] sm:$0xff] }
  0xd4   : > { %701 = vst [vmem:[#allocation1 + $0x30] ss:$2 sm:$0xff] %v434_v33 }
  0xd5   : > { %v1260_v1 = vadd.f32 %v1259_v58, %v1240_v60  ;;  %v702_v58 = vld.sshfl [vmem:[#allocation1] sm:$0xff pattern:$0x75316420] }
  0xd6   : > { %v1279_v2 = vpop.f32.mrf.mxu0 }
  0xd7   : > { %v1280_v5 = vadd.f32 %v1279_v2, %v1260_v1  ;;  %2598 = vmatmul.f32.vlgmr.msra.gmra.mxu2 %v301_v63  ;;  %v1299_v6 = vpop.f32.mrf.mxu1  ;;  %v435_v63 = vld [vmem:[#allocation4 + $0x1c0] sm:$0xff]  ;;  %v706_v9 = vld.sshfl [vmem:[#allocation1 + $0x20] sm:$0xff pattern:$0x75316420] }
  0xd8   : > { %2618 = vmatmul.f32.vlgmr.msra.gmra.mxu3 %v302_v0  ;;  %2757 = vmatpush.xpose.msra.mxu2 %v680_v46  ;;  %710 = vst [vmem:[#allocation1] ss:$2 sm:$0xff] %v435_v63 }
  0xd9   : > { %2558 = vmatmul.f32.vlgmr.msra.gmra.mxu0 %v299_v3  ;;  %v1300_v10 = vadd.f32 %v1299_v6, %v1280_v5  ;;  %2777 = vmatpush.xpose.msra.mxu3 %v681_v50  ;;  %v317_v3 = vld [vmem:[%s4540_s7 + $0x310] sm:$0xff]  ;;  %v315_v5 = vld [vmem:[%s4540_s7 + $0x300] sm:$0xff] }
  0xda   : > { %2717 = vmatpush.xpose.msra.mxu0 %v678_v49  ;;  %v1319_v11 = vpop.f32.mrf.mxu2  ;;  %2578 = vmatmul.f32.vlgmr.msra.gmra.mxu1 %v300_v7  ;;  %v704_v49 = vld.sshfl [vmem:[#allocation1 + $0x10] sm:$0xff pattern:$0x75316420] }
  0xdb   : > { %v1339_v12 = vpop.f32.mrf.mxu3  ;;  %v1320_v14 = vadd.f32 %v1319_v11, %v1300_v10  ;;  %2737 = vmatpush.xpose.msra.mxu1 %v679_v51  ;;  %v705_v51 = vld.sshfl [vmem:[#allocation1 + $0x18] sm:$0xff pattern:$0x75316420]  ;;  %v708_v6 = vld.sshfl [vmem:[#allocation1 + $0x30] sm:$0xff pattern:$0x75316420] }
  0xdc   : > { %711 = vst [vmem:[#allocation1 + $0x10] ss:$2 sm:$0xff] %v436_v52  ;;  %v709_v7 = vld.sshfl [vmem:[#allocation1 + $0x38] sm:$0xff pattern:$0x75316420]  ;;  %v438_v10 = vld [vmem:[#allocation4 + $0x1d8] sm:$0xff] }
  0xdd   : > { %v1340_v21 = vadd.f32 %v1339_v12, %v1320_v14  ;;  %713 = vst [vmem:[#allocation1 + $0x30] ss:$2 sm:$0xff] %v438_v10  ;;  %v437_v14 = vld [vmem:[#allocation4 + $0x1d0] sm:$0xff] }
  0xde   : > { %v1359_v22 = vpop.f32.mrf.mxu0 }
  0xdf   : > { %v1360_v25 = vadd.f32 %v1359_v22, %v1340_v21  ;;  %2678 = vmatmul.f32.vlgmr.msrb.gmra.mxu2 %v305_v13  ;;  %v1379_v26 = vpop.f32.mrf.mxu1  ;;  %v707_v13 = vld.sshfl [vmem:[#allocation1 + $0x28] sm:$0xff pattern:$0x75316420]  ;;  %v321_v22 = vld [vmem:[%s4540_s7 + $0x330] sm:$0xff] }
  0xe0   : > { %2698 = vmatmul.f32.vlgmr.msrb.gmra.mxu3 %v306_v18  ;;  %2837 = vmatpush.xpose.msrb.mxu2 %v684_v59  ;;  %712 = vst [vmem:[#allocation1 + $0x20] ss:$2 sm:$0xff] %v437_v14  ;;  %v331_v14 = vld [vmem:[%s4540_s7 + $0x380] sm:$0xff] }
  0xe1   : > { %2638 = vmatmul.f32.vlgmr.msrb.gmra.mxu0 %v303_v15  ;;  %v1380_v28 = vadd.f32 %v1379_v26, %v1360_v25  ;;  %2857 = vmatpush.xpose.msrb.mxu3 %v685_v61  ;;  %v312_v61 = vld [vmem:[%s4540_s7 + $0x2e8] sm:$0xff]  ;;  %v322_v25 = vld [vmem:[%s4540_s7 + $0x338] sm:$0xff] }
  0xe2   : > { %2797 = vmatpush.xpose.msrb.mxu0 %v682_v4  ;;  %v1399_v29 = vpop.f32.mrf.mxu2  ;;  %2658 = vmatmul.f32.vlgmr.msrb.gmra.mxu1 %v304_v27 }
  0xe3   : > { %v1419_v30 = vpop.f32.mrf.mxu3  ;;  %v1400_v31 = vadd.f32 %v1399_v29, %v1380_v28  ;;  %2817 = vmatpush.xpose.msrb.mxu1 %v683_v8  ;;  %v318_v8 = vld [vmem:[%s4540_s7 + $0x318] sm:$0xff]  ;;  %v716_v26 = vld.sshfl [vmem:[#allocation1 + $0x10] sm:$0xff pattern:$0x75316420] }
  0xe4   : > { %v714_v29 = vld.sshfl [vmem:[#allocation1] sm:$0xff pattern:$0x75316420] }
  0xe5   : > { %v1420_v37 = vadd.f32 %v1419_v30, %v1400_v31  ;;  %v717_v30 = vld.sshfl [vmem:[#allocation1 + $0x18] sm:$0xff pattern:$0x75316420]  ;;  %v715_v31 = vld.sshfl [vmem:[#allocation1 + $0x8] sm:$0xff pattern:$0x75316420] }
  0xe6   : > { %v1439_v38 = vpop.f32.mrf.mxu0 }
  0xe7   : > { %v1440_v43 = vadd.f32 %v1439_v38, %v1420_v37  ;;  %2758 = vmatmul.f32.vlgmr.msra.gmra.mxu2 %v309_v32  ;;  %v1459_v44 = vpop.f32.mrf.mxu1  ;;  %v439_v32 = vld [vmem:[#allocation4 + $0x1e0] sm:$0xff] }
  0xe8   : > { %2778 = vmatmul.f32.vlgmr.msra.gmra.mxu3 %v310_v35  ;;  %2917 = vmatpush.xpose.msra.mxu2 %v692_v16  ;;  %v320_v35 = vld [vmem:[%s4540_s7 + $0x328] sm:$0xff]  ;;  %722 = vst [vmem:[#allocation1] ss:$2 sm:$0xff] %v439_v32  ;;  %v719_v52 = vld.sshfl [vmem:[#allocation1 + $0x28] sm:$0xff pattern:$0x75316420] }
  0xe9   : > { %2718 = vmatmul.f32.vlgmr.msra.gmra.mxu0 %v307_v34  ;;  %v1460_v46 = vadd.f32 %v1459_v44, %v1440_v43  ;;  %2937 = vmatpush.xpose.msra.mxu3 %v693_v17  ;;  %v316_v17 = vld [vmem:[%s4540_s7 + $0x308] sm:$0xff]  ;;  %v325_v43 = vld [vmem:[%s4540_s7 + $0x350] sm:$0xff]  ;;  %v326_v44 = vld [vmem:[%s4540_s7 + $0x358] sm:$0xff] }
  0xea   : > { %2877 = vmatpush.xpose.msra.mxu0 %v690_v19  ;;  %v1479_v47 = vpop.f32.mrf.mxu2  ;;  %2738 = vmatmul.f32.vlgmr.msra.gmra.mxu1 %v308_v45  ;;  %v448_v32 = vld [vmem:[#allocation4 + $0x228] sm:$0xff] }
  0xeb   : > { %v1499_v48 = vpop.f32.mrf.mxu3  ;;  %v1480_v50 = vadd.f32 %v1479_v47, %v1460_v46  ;;  %2897 = vmatpush.xpose.msra.mxu1 %v691_v23  ;;  %v440_v23 = vld [vmem:[#allocation4 + $0x1e8] sm:$0xff]  ;;  %v323_v47 = vld [vmem:[%s4540_s7 + $0x340] sm:$0xff] }
  0xec   : > { %723 = vst [vmem:[#allocation1 + $0x10] ss:$2 sm:$0xff] %v440_v23 }
  0xed   : > { %v1500_v55 = vadd.f32 %v1499_v48, %v1480_v50  ;;  %v718_v48 = vld.sshfl [vmem:[#allocation1 + $0x20] sm:$0xff pattern:$0x75316420] }
  0xee   : > { %v1519_v56 = vpop.f32.mrf.mxu0 }
  0xef   : > { %v1520_v59 = vadd.f32 %v1519_v56, %v1500_v55  ;;  %2838 = vmatmul.f32.vlgmr.msrb.gmra.mxu2 %v313_v53  ;;  %v1539_v60 = vpop.f32.mrf.mxu1  ;;  %v441_v53 = vld [vmem:[#allocation4 + $0x1f0] sm:$0xff]  ;;  %v726_v63 = vld.sshfl [vmem:[#allocation1] sm:$0xff pattern:$0x75316420] }
  0xf0   : > { %2858 = vmatmul.f32.vlgmr.msrb.gmra.mxu3 %v314_v54  ;;  %2997 = vmatpush.xpose.msrb.mxu2 %v696_v36  ;;  %724 = vst [vmem:[#allocation1 + $0x20] ss:$2 sm:$0xff] %v441_v53 }
  0xf1   : > { %2798 = vmatmul.f32.vlgmr.msrb.gmra.mxu0 %v311_v57  ;;  %v1540_v0 = vadd.f32 %v1539_v60, %v1520_v59  ;;  %3017 = vmatpush.xpose.msrb.mxu3 %v697_v40  ;;  %v329_v57 = vld [vmem:[%s4540_s7 + $0x370] sm:$0xff]  ;;  %v327_v59 = vld [vmem:[%s4540_s7 + $0x360] sm:$0xff] }
  0xf2   : > { %2957 = vmatpush.xpose.msrb.mxu0 %v694_v39  ;;  %v1559_v1 = vpop.f32.mrf.mxu2  ;;  %2818 = vmatmul.f32.vlgmr.msrb.gmra.mxu1 %v312_v61  ;;  %v720_v39 = vld.sshfl [vmem:[#allocation1 + $0x30] sm:$0xff pattern:$0x75316420] }
  0xf3   : > { %v1579_v2 = vpop.f32.mrf.mxu3  ;;  %v1560_v4 = vadd.f32 %v1559_v1, %v1540_v0  ;;  %2977 = vmatpush.xpose.msrb.mxu1 %v695_v41  ;;  %v721_v41 = vld.sshfl [vmem:[#allocation1 + $0x38] sm:$0xff pattern:$0x75316420]  ;;  %v728_v60 = vld.sshfl [vmem:[#allocation1 + $0x10] sm:$0xff pattern:$0x75316420] }
  0xf4   : > { %725 = vst [vmem:[#allocation1 + $0x30] ss:$2 sm:$0xff] %v442_v42  ;;  %v729_v61 = vld.sshfl [vmem:[#allocation1 + $0x18] sm:$0xff pattern:$0x75316420]  ;;  %v444_v0 = vld [vmem:[#allocation4 + $0x208] sm:$0xff] }
  0xf5   : > { %v1580_v11 = vadd.f32 %v1579_v2, %v1560_v4  ;;  %735 = vst [vmem:[#allocation1 + $0x10] ss:$2 sm:$0xff] %v444_v0  ;;  %v443_v4 = vld [vmem:[#allocation4 + $0x200] sm:$0xff] }
  0xf6   : > { %v1599_v12 = vpop.f32.mrf.mxu0 }
  0xf7   : > { %v1600_v15 = vadd.f32 %v1599_v12, %v1580_v11  ;;  %2918 = vmatmul.f32.vlgmr.msra.gmra.mxu2 %v317_v3  ;;  %v1619_v16 = vpop.f32.mrf.mxu1  ;;  %v727_v3 = vld.sshfl [vmem:[#allocation1 + $0x8] sm:$0xff pattern:$0x75316420]  ;;  %v333_v12 = vld [vmem:[%s4540_s7 + $0x390] sm:$0xff] }
  0xf8   : > { %2938 = vmatmul.f32.vlgmr.msra.gmra.mxu3 %v318_v8  ;;  %3077 = vmatpush.xpose.msra.mxu2 %v704_v49  ;;  %734 = vst [vmem:[#allocation1] ss:$2 sm:$0xff] %v443_v4  ;;  %v343_v4 = vld [vmem:[%s4540_s7 + $0x3e0] sm:$0xff] }
  0xf9   : > { %2878 = vmatmul.f32.vlgmr.msra.gmra.mxu0 %v315_v5  ;;  %v1620_v18 = vadd.f32 %v1619_v16, %v1600_v15  ;;  %3097 = vmatpush.xpose.msra.mxu3 %v705_v51  ;;  %v324_v51 = vld [vmem:[%s4540_s7 + $0x348] sm:$0xff]  ;;  %v334_v15 = vld [vmem:[%s4540_s7 + $0x398] sm:$0xff] }
  0xfa   : > { %3037 = vmatpush.xpose.msra.mxu0 %v702_v58  ;;  %v1639_v19 = vpop.f32.mrf.mxu2  ;;  %2898 = vmatmul.f32.vlgmr.msra.gmra.mxu1 %v316_v17 }
  0xfb   : > { %v1659_v20 = vpop.f32.mrf.mxu3  ;;  %v1640_v21 = vadd.f32 %v1639_v19, %v1620_v18  ;;  %3057 = vmatpush.xpose.msra.mxu1 %v703_v62  ;;  %v330_v62 = vld [vmem:[%s4540_s7 + $0x378] sm:$0xff]  ;;  %v732_v16 = vld.sshfl [vmem:[#allocation1 + $0x30] sm:$0xff pattern:$0x75316420] }
  0xfc   : > { %v730_v19 = vld.sshfl [vmem:[#allocation1 + $0x20] sm:$0xff pattern:$0x75316420] }
  0xfd   : > { %v1660_v27 = vadd.f32 %v1659_v20, %v1640_v21  ;;  %v733_v20 = vld.sshfl [vmem:[#allocation1 + $0x38] sm:$0xff pattern:$0x75316420]  ;;  %v731_v21 = vld.sshfl [vmem:[#allocation1 + $0x28] sm:$0xff pattern:$0x75316420] }
  0xfe   : > { %v1679_v28 = vpop.f32.mrf.mxu0 }
  0xff   : > { %v1680_v33 = vadd.f32 %v1679_v28, %v1660_v27  ;;  %2998 = vmatmul.f32.vlgmr.msrb.gmra.mxu2 %v321_v22  ;;  %v1699_v34 = vpop.f32.mrf.mxu1  ;;  %v445_v22 = vld [vmem:[#allocation4 + $0x210] sm:$0xff]  ;;  %v739_v42 = vld.sshfl [vmem:[#allocation1 + $0x8] sm:$0xff pattern:$0x75316420] }
 0x100   : > { %3018 = vmatmul.f32.vlgmr.msrb.gmra.mxu3 %v322_v25  ;;  %3157 = vmatpush.xpose.msrb.mxu2 %v708_v6  ;;  %v332_v25 = vld [vmem:[%s4540_s7 + $0x388] sm:$0xff]  ;;  %736 = vst [vmem:[#allocation1 + $0x20] ss:$2 sm:$0xff] %v445_v22  ;;  %v454_v22 = vld [vmem:[#allocation4 + $0x258] sm:$0xff] }
 0x101   : > { %2958 = vmatmul.f32.vlgmr.msrb.gmra.mxu0 %v319_v24  ;;  %v1700_v36 = vadd.f32 %v1699_v34, %v1680_v33  ;;  %3177 = vmatpush.xpose.msrb.mxu3 %v709_v7  ;;  %v328_v7 = vld [vmem:[%s4540_s7 + $0x368] sm:$0xff]  ;;  %v337_v33 = vld [vmem:[%s4540_s7 + $0x3b0] sm:$0xff]  ;;  %v338_v34 = vld [vmem:[%s4540_s7 + $0x3b8] sm:$0xff] }
 0x102   : > { %3117 = vmatpush.xpose.msrb.mxu0 %v706_v9  ;;  %v1719_v37 = vpop.f32.mrf.mxu2  ;;  %2978 = vmatmul.f32.vlgmr.msrb.gmra.mxu1 %v320_v35 }
 0x103   : > { %v1739_v38 = vpop.f32.mrf.mxu3  ;;  %v1720_v40 = vadd.f32 %v1719_v37, %v1700_v36  ;;  %3137 = vmatpush.xpose.msrb.mxu1 %v707_v13  ;;  %v446_v13 = vld [vmem:[#allocation4 + $0x218] sm:$0xff]  ;;  %v335_v37 = vld [vmem:[%s4540_s7 + $0x3a0] sm:$0xff] }
 0x104   : > { %737 = vst [vmem:[#allocation1 + $0x30] ss:$2 sm:$0xff] %v446_v13 }
 0x105   : > { %v1740_v45 = vadd.f32 %v1739_v38, %v1720_v40  ;;  %v738_v38 = vld.sshfl [vmem:[#allocation1] sm:$0xff pattern:$0x75316420] }
 0x106   : > { %v1759_v46 = vpop.f32.mrf.mxu0 }
 0x107   : > { %v1760_v49 = vadd.f32 %v1759_v46, %v1740_v45  ;;  %3078 = vmatmul.f32.vlgmr.msra.gmra.mxu2 %v325_v43  ;;  %v1779_v50 = vpop.f32.mrf.mxu1  ;;  %v447_v43 = vld [vmem:[#allocation4 + $0x220] sm:$0xff]  ;;  %v742_v53 = vld.sshfl [vmem:[#allocation1 + $0x20] sm:$0xff pattern:$0x75316420] }
 0x108   : > { %3098 = vmatmul.f32.vlgmr.msra.gmra.mxu3 %v326_v44  ;;  %3237 = vmatpush.xpose.msra.mxu2 %v716_v26  ;;  %746 = vst [vmem:[#allocation1] ss:$2 sm:$0xff] %v447_v43 }
 0x109   : > { %3038 = vmatmul.f32.vlgmr.msra.gmra.mxu0 %v323_v47  ;;  %v1780_v54 = vadd.f32 %v1779_v50, %v1760_v49  ;;  %3257 = vmatpush.xpose.msra.mxu3 %v717_v30  ;;  %v341_v47 = vld [vmem:[%s4540_s7 + $0x3d0] sm:$0xff]  ;;  %v339_v49 = vld [vmem:[%s4540_s7 + $0x3c0] sm:$0xff] }
 0x10a   : > { %3197 = vmatpush.xpose.msra.mxu0 %v714_v29  ;;  %v1799_v55 = vpop.f32.mrf.mxu2  ;;  %3058 = vmatmul.f32.vlgmr.msra.gmra.mxu1 %v324_v51  ;;  %v740_v29 = vld.sshfl [vmem:[#allocation1 + $0x10] sm:$0xff pattern:$0x75316420] }
 0x10b   : > { %v1819_v56 = vpop.f32.mrf.mxu3  ;;  %v1800_v58 = vadd.f32 %v1799_v55, %v1780_v54  ;;  %3217 = vmatpush.xpose.msra.mxu1 %v715_v31  ;;  %v741_v31 = vld.sshfl [vmem:[#allocation1 + $0x18] sm:$0xff pattern:$0x75316420]  ;;  %v744_v50 = vld.sshfl [vmem:[#allocation1 + $0x30] sm:$0xff pattern:$0x75316420] }
 0x10c   : > { %747 = vst [vmem:[#allocation1 + $0x10] ss:$2 sm:$0xff] %v448_v32  ;;  %v745_v51 = vld.sshfl [vmem:[#allocation1 + $0x38] sm:$0xff pattern:$0x75316420]  ;;  %v450_v54 = vld [vmem:[#allocation4 + $0x238] sm:$0xff] }
 0x10d   : > { %v1820_v1 = vadd.f32 %v1819_v56, %v1800_v58  ;;  %749 = vst [vmem:[#allocation1 + $0x30] ss:$2 sm:$0xff] %v450_v54  ;;  %v449_v58 = vld [vmem:[#allocation4 + $0x230] sm:$0xff] }
 0x10e   : > { %v1839_v2 = vpop.f32.mrf.mxu0 }
 0x10f   : > { %v1840_v5 = vadd.f32 %v1839_v2, %v1820_v1  ;;  %3158 = vmatmul.f32.vlgmr.msrb.gmra.mxu2 %v329_v57  ;;  %v1859_v6 = vpop.f32.mrf.mxu1  ;;  %v743_v57 = vld.sshfl [vmem:[#allocation1 + $0x28] sm:$0xff pattern:$0x75316420]  ;;  %v345_v2 = vld [vmem:[%s4540_s7 + $0x3f0] sm:$0xff] }
 0x110   : > { %3178 = vmatmul.f32.vlgmr.msrb.gmra.mxu3 %v330_v62  ;;  %3317 = vmatpush.xpose.msrb.mxu2 %v720_v39  ;;  %748 = vst [vmem:[#allocation1 + $0x20] ss:$2 sm:$0xff] %v449_v58  ;;  %v355_v58 = vld [vmem:[%s4540_s7 + $0x440] sm:$0xff] }
 0x111   : > { %3118 = vmatmul.f32.vlgmr.msrb.gmra.mxu0 %v327_v59  ;;  %v1860_v8 = vadd.f32 %v1859_v6, %v1840_v5  ;;  %3337 = vmatpush.xpose.msrb.mxu3 %v721_v41  ;;  %v336_v41 = vld [vmem:[%s4540_s7 + $0x3a8] sm:$0xff]  ;;  %v346_v5 = vld [vmem:[%s4540_s7 + $0x3f8] sm:$0xff] }
 0x112   : > { %3277 = vmatpush.xpose.msrb.mxu0 %v718_v48  ;;  %v1879_v9 = vpop.f32.mrf.mxu2  ;;  %3138 = vmatmul.f32.vlgmr.msrb.gmra.mxu1 %v328_v7 }
 0x113   : > { %v1899_v10 = vpop.f32.mrf.mxu3  ;;  %v1880_v11 = vadd.f32 %v1879_v9, %v1860_v8  ;;  %3297 = vmatpush.xpose.msrb.mxu1 %v719_v52  ;;  %v342_v52 = vld [vmem:[%s4540_s7 + $0x3d8] sm:$0xff]  ;;  %v752_v6 = vld.sshfl [vmem:[#allocation1 + $0x10] sm:$0xff pattern:$0x75316420] }
 0x114   : > { %v750_v9 = vld.sshfl [vmem:[#allocation1] sm:$0xff pattern:$0x75316420] }
 0x115   : > { %v1900_v17 = vadd.f32 %v1899_v10, %v1880_v11  ;;  %v753_v10 = vld.sshfl [vmem:[#allocation1 + $0x18] sm:$0xff pattern:$0x75316420]  ;;  %v751_v11 = vld.sshfl [vmem:[#allocation1 + $0x8] sm:$0xff pattern:$0x75316420] }
 0x116   : > { %v1919_v18 = vpop.f32.mrf.mxu0 }
 0x117   : > { %v1920_v23 = vadd.f32 %v1919_v18, %v1900_v17  ;;  %3238 = vmatmul.f32.vlgmr.msra.gmra.mxu2 %v333_v12  ;;  %v1939_v24 = vpop.f32.mrf.mxu1  ;;  %v451_v12 = vld [vmem:[#allocation4 + $0x240] sm:$0xff] }
 0x118   : > { %3258 = vmatmul.f32.vlgmr.msra.gmra.mxu3 %v334_v15  ;;  %3397 = vmatpush.xpose.msra.mxu2 %v728_v60  ;;  %v344_v15 = vld [vmem:[%s4540_s7 + $0x3e8] sm:$0xff]  ;;  %758 = vst [vmem:[#allocation1] ss:$2 sm:$0xff] %v451_v12  ;;  %v755_v32 = vld.sshfl [vmem:[#allocation1 + $0x28] sm:$0xff pattern:$0x75316420] }
 0x119   : > { %3198 = vmatmul.f32.vlgmr.msra.gmra.mxu0 %v331_v14  ;;  %v1940_v26 = vadd.f32 %v1939_v24, %v1920_v23  ;;  %3417 = vmatpush.xpose.msra.mxu3 %v729_v61  ;;  %v340_v61 = vld [vmem:[%s4540_s7 + $0x3c8] sm:$0xff]  ;;  %v349_v23 = vld [vmem:[%s4540_s7 + $0x410] sm:$0xff]  ;;  %v350_v24 = vld [vmem:[%s4540_s7 + $0x418] sm:$0xff] }
 0x11a   : > { %3357 = vmatpush.xpose.msra.mxu0 %v726_v63  ;;  %v1959_v27 = vpop.f32.mrf.mxu2  ;;  %3218 = vmatmul.f32.vlgmr.msra.gmra.mxu1 %v332_v25 }
 0x11b   : > { %v1979_v28 = vpop.f32.mrf.mxu3  ;;  %v1960_v30 = vadd.f32 %v1959_v27, %v1940_v26  ;;  %3377 = vmatpush.xpose.msra.mxu1 %v727_v3  ;;  %v452_v3 = vld [vmem:[#allocation4 + $0x248] sm:$0xff]  ;;  %v347_v27 = vld [vmem:[%s4540_s7 + $0x400] sm:$0xff] }
 0x11c   : > { %759 = vst [vmem:[#allocation1 + $0x10] ss:$2 sm:$0xff] %v452_v3 }
 0x11d   : > { %v1980_v35 = vadd.f32 %v1979_v28, %v1960_v30  ;;  %v754_v28 = vld.sshfl [vmem:[#allocation1 + $0x20] sm:$0xff pattern:$0x75316420] }
 0x11e   : > { %v1999_v36 = vpop.f32.mrf.mxu0 }
 0x11f   : > { %v2000_v39 = vadd.f32 %v1999_v36, %v1980_v35  ;;  %3318 = vmatmul.f32.vlgmr.msrb.gmra.mxu2 %v337_v33  ;;  %v2019_v40 = vpop.f32.mrf.mxu1  ;;  %v453_v33 = vld [vmem:[#allocation4 + $0x250] sm:$0xff]  ;;  %v762_v43 = vld.sshfl [vmem:[#allocation1] sm:$0xff pattern:$0x75316420] }
 0x120   : > { %3338 = vmatmul.f32.vlgmr.msrb.gmra.mxu3 %v338_v34  ;;  %3477 = vmatpush.xpose.msrb.mxu2 %v732_v16  ;;  %760 = vst [vmem:[#allocation1 + $0x20] ss:$2 sm:$0xff] %v453_v33 }
 0x121   : > { %3278 = vmatmul.f32.vlgmr.msrb.gmra.mxu0 %v335_v37  ;;  %v2020_v44 = vadd.f32 %v2019_v40, %v2000_v39  ;;  %3497 = vmatpush.xpose.msrb.mxu3 %v733_v20  ;;  %v353_v37 = vld [vmem:[%s4540_s7 + $0x430] sm:$0xff]  ;;  %v351_v39 = vld [vmem:[%s4540_s7 + $0x420] sm:$0xff] }
 0x122   : > { %3437 = vmatpush.xpose.msrb.mxu0 %v730_v19  ;;  %v2039_v45 = vpop.f32.mrf.mxu2  ;;  %3298 = vmatmul.f32.vlgmr.msrb.gmra.mxu1 %v336_v41  ;;  %v756_v19 = vld.sshfl [vmem:[#allocation1 + $0x30] sm:$0xff pattern:$0x75316420] }
 0x123   : > { %v2059_v46 = vpop.f32.mrf.mxu3  ;;  %v2040_v48 = vadd.f32 %v2039_v45, %v2020_v44  ;;  %3457 = vmatpush.xpose.msrb.mxu1 %v731_v21  ;;  %v757_v21 = vld.sshfl [vmem:[#allocation1 + $0x38] sm:$0xff pattern:$0x75316420]  ;;  %v764_v40 = vld.sshfl [vmem:[#allocation1 + $0x10] sm:$0xff pattern:$0x75316420] }
 0x124   : > { %761 = vst [vmem:[#allocation1 + $0x30] ss:$2 sm:$0xff] %v454_v22  ;;  %v765_v41 = vld.sshfl [vmem:[#allocation1 + $0x18] sm:$0xff pattern:$0x75316420]  ;;  %v456_v44 = vld [vmem:[#allocation4 + $0x268] sm:$0xff] }
 0x125   : > { %v2060_v55 = vadd.f32 %v2059_v46, %v2040_v48  ;;  %771 = vst [vmem:[#allocation1 + $0x10] ss:$2 sm:$0xff] %v456_v44  ;;  %v455_v48 = vld [vmem:[#allocation4 + $0x260] sm:$0xff]  ;;  %v365_v22 = vld [vmem:[%s4540_s7 + $0x490] sm:$0xff] }
 0x126   : > { %v2079_v56 = vpop.f32.mrf.mxu0 }
 0x127   : > { %v2080_v59 = vadd.f32 %v2079_v56, %v2060_v55  ;;  %3398 = vmatmul.f32.vlgmr.msra.gmra.mxu2 %v341_v47  ;;  %v2099_v60 = vpop.f32.mrf.mxu1  ;;  %v763_v47 = vld.sshfl [vmem:[#allocation1 + $0x8] sm:$0xff pattern:$0x75316420]  ;;  %v357_v56 = vld [vmem:[%s4540_s7 + $0x450] sm:$0xff] }
 0x128   : > { %3418 = vmatmul.f32.vlgmr.msra.gmra.mxu3 %v342_v52  ;;  %3557 = vmatpush.xpose.msra.mxu2 %v740_v29  ;;  %770 = vst [vmem:[#allocation1] ss:$2 sm:$0xff] %v455_v48  ;;  %v368_v48 = vld [vmem:[%s4540_s7 + $0x4a8] sm:$0xff] }
 0x129   : > { %3358 = vmatmul.f32.vlgmr.msra.gmra.mxu0 %v339_v49  ;;  %v2100_v62 = vadd.f32 %v2099_v60, %v2080_v59  ;;  %3577 = vmatpush.xpose.msra.mxu3 %v741_v31  ;;  %v348_v31 = vld [vmem:[%s4540_s7 + $0x408] sm:$0xff]  ;;  %v358_v59 = vld [vmem:[%s4540_s7 + $0x458] sm:$0xff] }
 0x12a   : > { %3517 = vmatpush.xpose.msra.mxu0 %v738_v38  ;;  %v2119_v63 = vpop.f32.mrf.mxu2  ;;  %3378 = vmatmul.f32.vlgmr.msra.gmra.mxu1 %v340_v61 }
 0x12b   : > { %v2139_v0 = vpop.f32.mrf.mxu3  ;;  %v2120_v1 = vadd.f32 %v2119_v63, %v2100_v62  ;;  %3537 = vmatpush.xpose.msra.mxu1 %v739_v42  ;;  %v354_v42 = vld [vmem:[%s4540_s7 + $0x438] sm:$0xff]  ;;  %v768_v60 = vld.sshfl [vmem:[#allocation1 + $0x30] sm:$0xff pattern:$0x75316420] }
 0x12c   : > { %v766_v63 = vld.sshfl [vmem:[#allocation1 + $0x20] sm:$0xff pattern:$0x75316420] }
 0x12d   : > { %v2140_v7 = vadd.f32 %v2139_v0, %v2120_v1  ;;  %v769_v0 = vld.sshfl [vmem:[#allocation1 + $0x38] sm:$0xff pattern:$0x75316420]  ;;  %v767_v1 = vld.sshfl [vmem:[#allocation1 + $0x28] sm:$0xff pattern:$0x75316420] }
 0x12e   : > { %v2159_v8 = vpop.f32.mrf.mxu0 }
 0x12f   : > { %v2160_v13 = vadd.f32 %v2159_v8, %v2140_v7  ;;  %3478 = vmatmul.f32.vlgmr.msrb.gmra.mxu2 %v345_v2  ;;  %v2179_v14 = vpop.f32.mrf.mxu1  ;;  %v457_v2 = vld [vmem:[#allocation4 + $0x270] sm:$0xff]  ;;  %v775_v33 = vld.sshfl [vmem:[#allocation1 + $0x8] sm:$0xff pattern:$0x75316420] }
 0x130   : > { %3498 = vmatmul.f32.vlgmr.msrb.gmra.mxu3 %v346_v5  ;;  %3637 = vmatpush.xpose.msrb.mxu2 %v744_v50  ;;  %v356_v5 = vld [vmem:[%s4540_s7 + $0x448] sm:$0xff]  ;;  %772 = vst [vmem:[#allocation1 + $0x20] ss:$2 sm:$0xff] %v457_v2  ;;  %v377_v2 = vld [vmem:[%s4540_s7 + $0x4f0] sm:$0xff] }
 0x131   : > { %3438 = vmatmul.f32.vlgmr.msrb.gmra.mxu0 %v343_v4  ;;  %v2180_v16 = vadd.f32 %v2179_v14, %v2160_v13  ;;  %3657 = vmatpush.xpose.msrb.mxu3 %v745_v51  ;;  %v352_v51 = vld [vmem:[%s4540_s7 + $0x428] sm:$0xff]  ;;  %v359_v14 = vld [vmem:[%s4540_s7 + $0x460] sm:$0xff] }
 0x132   : > { %3597 = vmatpush.xpose.msrb.mxu0 %v742_v53  ;;  %v2199_v17 = vpop.f32.mrf.mxu2  ;;  %3458 = vmatmul.f32.vlgmr.msrb.gmra.mxu1 %v344_v15 }
 0x133   : > { %v2219_v18 = vpop.f32.mrf.mxu3  ;;  %v2200_v20 = vadd.f32 %v2199_v17, %v2180_v16  ;;  %3617 = vmatpush.xpose.msrb.mxu1 %v743_v57  ;;  %v458_v57 = vld [vmem:[#allocation4 + $0x278] sm:$0xff]  ;;  %v360_v17 = vld [vmem:[%s4540_s7 + $0x468] sm:$0xff] }
 0x134   : > { %773 = vst [vmem:[#allocation1 + $0x30] ss:$2 sm:$0xff] %v458_v57 }
 0x135   : > { %v2220_v25 = vadd.f32 %v2219_v18, %v2200_v20 }
 0x136   : > { %v2239_v26 = vpop.f32.mrf.mxu0 }
 0x137   : > { %v2240_v29 = vadd.f32 %v2239_v26, %v2220_v25  ;;  %3558 = vmatmul.f32.vlgmr.msra.gmra.mxu2 %v349_v23  ;;  %v2259_v30 = vpop.f32.mrf.mxu1  ;;  %v366_v23 = vld [vmem:[%s4540_s7 + $0x498] sm:$0xff]  ;;  %v363_v26 = vld [vmem:[%s4540_s7 + $0x480] sm:$0xff] }
 0x138   : > { %3578 = vmatmul.f32.vlgmr.msra.gmra.mxu3 %v350_v24  ;;  %3717 = vmatpush.xpose.msra.mxu2 %v752_v6  ;;  %v778_v44 = vld.sshfl [vmem:[#allocation1 + $0x20] sm:$0xff pattern:$0x75316420] }
 0x139   : > { %3518 = vmatmul.f32.vlgmr.msra.gmra.mxu0 %v347_v27  ;;  %v2260_v34 = vadd.f32 %v2259_v30, %v2240_v29  ;;  %3737 = vmatpush.xpose.msra.mxu3 %v753_v10  ;;  %v361_v10 = vld [vmem:[%s4540_s7 + $0x470] sm:$0xff]  ;;  %v776_v27 = vld.sshfl [vmem:[#allocation1 + $0x10] sm:$0xff pattern:$0x75316420] }
 0x13a   : > { %3677 = vmatpush.xpose.msra.mxu0 %v750_v9  ;;  %v2279_v35 = vpop.f32.mrf.mxu2  ;;  %3538 = vmatmul.f32.vlgmr.msra.gmra.mxu1 %v348_v31  ;;  %v777_v29 = vld.sshfl [vmem:[#allocation1 + $0x18] sm:$0xff pattern:$0x75316420] }
 0x13b   : > { %v2299_v36 = vpop.f32.mrf.mxu3  ;;  %v2280_v38 = vadd.f32 %v2279_v35, %v2260_v34  ;;  %3697 = vmatpush.xpose.msra.mxu1 %v751_v11  ;;  %v362_v11 = vld [vmem:[%s4540_s7 + $0x478] sm:$0xff] }
 0x13d   : > { %v2300_v45 = vadd.f32 %v2299_v36, %v2280_v38  ;;  %v369_v38 = vld [vmem:[%s4540_s7 + $0x4b0] sm:$0xff] }
 0x13e   : > { %v2319_v46 = vpop.f32.mrf.mxu0 }
 0x13f   : > { %v2320_v49 = vadd.f32 %v2319_v46, %v2300_v45  ;;  %3638 = vmatmul.f32.vlgmr.msrb.gmra.mxu2 %v353_v37  ;;  %v2339_v50 = vpop.f32.mrf.mxu1  ;;  %v781_v45 = vld.sshfl [vmem:[#allocation1 + $0x38] sm:$0xff pattern:$0x75316420] }
 0x140   : > { %3658 = vmatmul.f32.vlgmr.msrb.gmra.mxu3 %v354_v42  ;;  %3797 = vmatpush.xpose.msrb.mxu2 %v756_v19  ;;  %v367_v42 = vld [vmem:[%s4540_s7 + $0x4a0] sm:$0xff] }
 0x141   : > { %3598 = vmatmul.f32.vlgmr.msrb.gmra.mxu0 %v351_v39  ;;  %v2340_v52 = vadd.f32 %v2339_v50, %v2320_v49  ;;  %3817 = vmatpush.xpose.msrb.mxu3 %v757_v21  ;;  %v370_v39 = vld [vmem:[%s4540_s7 + $0x4b8] sm:$0xff]  ;;  %v779_v49 = vld.sshfl [vmem:[#allocation1 + $0x28] sm:$0xff pattern:$0x75316420] }
 0x142   : > { %3757 = vmatpush.xpose.msrb.mxu0 %v754_v28  ;;  %v2359_v53 = vpop.f32.mrf.mxu2  ;;  %3618 = vmatmul.f32.vlgmr.msrb.gmra.mxu1 %v352_v51  ;;  %v774_v28 = vld.sshfl [vmem:[#allocation1] sm:$0xff pattern:$0x75316420] }
 0x143   : > { %v2379_v54 = vpop.f32.mrf.mxu3  ;;  %v2360_v55 = vadd.f32 %v2359_v53, %v2340_v52  ;;  %3777 = vmatpush.xpose.msrb.mxu1 %v755_v32  ;;  %v364_v32 = vld [vmem:[%s4540_s7 + $0x488] sm:$0xff] }
 0x145   : > { %v2380_v61 = vadd.f32 %v2379_v54, %v2360_v55  ;;  %v373_v54 = vld [vmem:[%s4540_s7 + $0x4d0] sm:$0xff]  ;;  %v374_v55 = vld [vmem:[%s4540_s7 + $0x4d8] sm:$0xff] }
 0x146   : > { %v2399_v62 = vpop.f32.mrf.mxu0 }
 0x147   : > { %v2400_v3 = vadd.f32 %v2399_v62, %v2380_v61  ;;  %3718 = vmatmul.f32.vlgmr.msra.gmra.mxu2 %v357_v56  ;;  %v2419_v4 = vpop.f32.mrf.mxu1  ;;  %v372_v61 = vld [vmem:[%s4540_s7 + $0x4c8] sm:$0xff] }
 0x148   : > { %3738 = vmatmul.f32.vlgmr.msra.gmra.mxu3 %v358_v59  ;;  %3877 = vmatpush.xpose.msra.mxu2 %v764_v40 }
 0x149   : > { %3678 = vmatmul.f32.vlgmr.msra.gmra.mxu0 %v355_v58  ;;  %v2420_v6 = vadd.f32 %v2419_v4, %v2400_v3  ;;  %3897 = vmatpush.xpose.msra.mxu3 %v765_v41  ;;  %v371_v58 = vld [vmem:[%s4540_s7 + $0x4c0] sm:$0xff]  ;;  %v378_v3 = vld [vmem:[%s4540_s7 + $0x4f8] sm:$0xff] }
 0x14a   : > { %3837 = vmatpush.xpose.msra.mxu0 %v762_v43  ;;  %v2439_v7 = vpop.f32.mrf.mxu2  ;;  %3698 = vmatmul.f32.vlgmr.msra.gmra.mxu1 %v356_v5  ;;  %v780_v43 = vld.sshfl [vmem:[#allocation1 + $0x30] sm:$0xff pattern:$0x75316420] }
 0x14b   : > { %v2459_v8 = vpop.f32.mrf.mxu3  ;;  %v2440_v9 = vadd.f32 %v2439_v7, %v2420_v6  ;;  %3857 = vmatpush.xpose.msra.mxu1 %v763_v47  ;;  %v375_v6 = vld [vmem:[%s4540_s7 + $0x4e0] sm:$0xff] }
 0x14d   : > { %v2460_v12 = vadd.f32 %v2459_v8, %v2440_v9  ;;  %v376_v9 = vld [vmem:[%s4540_s7 + $0x4e8] sm:$0xff] }
 0x14e   : > { %v2479_v13 = vpop.f32.mrf.mxu0 }
 0x14f   : > { %v2480_v15 = vadd.f32 %v2479_v13, %v2460_v12  ;;  %3798 = vmatmul.f32.vlgmr.msrb.gmra.mxu2 %v361_v10  ;;  %v2499_v16 = vpop.f32.mrf.mxu1 }
 0x150   : > { %3818 = vmatmul.f32.vlgmr.msrb.gmra.mxu3 %v362_v11  ;;  %3957 = vmatpush.xpose.msrb.mxu2 %v768_v60 }
 0x151   : > { %3758 = vmatmul.f32.vlgmr.msrb.gmra.mxu0 %v359_v14  ;;  %v2500_v18 = vadd.f32 %v2499_v16, %v2480_v15  ;;  %3977 = vmatpush.xpose.msrb.mxu3 %v769_v0 }
 0x152   : > { %3917 = vmatpush.xpose.msrb.mxu0 %v766_v63  ;;  %v2519_v19 = vpop.f32.mrf.mxu2  ;;  %3778 = vmatmul.f32.vlgmr.msrb.gmra.mxu1 %v360_v17 }
 0x153   : > { %v2539_v20 = vpop.f32.mrf.mxu3  ;;  %v2520_v21 = vadd.f32 %v2519_v19, %v2500_v18  ;;  %3937 = vmatpush.xpose.msrb.mxu1 %v767_v1 }
 0x155   : > { %v2540_v24 = vadd.f32 %v2539_v20, %v2520_v21 }
 0x156   : > { %v2559_v25 = vpop.f32.mrf.mxu0 }
 0x157   : > { %v2560_v30 = vadd.f32 %v2559_v25, %v2540_v24  ;;  %3878 = vmatmul.f32.vlgmr.msra.gmra.mxu2 %v365_v22  ;;  %v2579_v31 = vpop.f32.mrf.mxu1 }
 0x158   : > { %3898 = vmatmul.f32.vlgmr.msra.gmra.mxu3 %v366_v23  ;;  %4037 = vmatpush.xpose.msra.mxu2 %v776_v27 }
 0x159   : > { %3838 = vmatmul.f32.vlgmr.msra.gmra.mxu0 %v363_v26  ;;  %v2580_v34 = vadd.f32 %v2579_v31, %v2560_v30  ;;  %4057 = vmatpush.xpose.msra.mxu3 %v777_v29 }
 0x15a   : > { %3997 = vmatpush.xpose.msra.mxu0 %v774_v28  ;;  %v2599_v35 = vpop.f32.mrf.mxu2  ;;  %3858 = vmatmul.f32.vlgmr.msra.gmra.mxu1 %v364_v32 }
 0x15b   : > { %v2619_v36 = vpop.f32.mrf.mxu3  ;;  %v2600_v37 = vadd.f32 %v2599_v35, %v2580_v34  ;;  %4017 = vmatpush.xpose.msra.mxu1 %v775_v33 }
 0x15d   : > { %v2620_v40 = vadd.f32 %v2619_v36, %v2600_v37 }
 0x15e   : > { %v2639_v41 = vpop.f32.mrf.mxu0 }
 0x15f   : > { %v2640_v46 = vadd.f32 %v2639_v41, %v2620_v40  ;;  %3958 = vmatmul.f32.vlgmr.msrb.gmra.mxu2 %v369_v38  ;;  %v2659_v47 = vpop.f32.mrf.mxu1 }
 0x160   : > { %3978 = vmatmul.f32.vlgmr.msrb.gmra.mxu3 %v370_v39  ;;  %4117 = vmatpush.xpose.msrb.mxu2 %v780_v43 }
 0x161   : > { %3918 = vmatmul.f32.vlgmr.msrb.gmra.mxu0 %v367_v42  ;;  %v2660_v50 = vadd.f32 %v2659_v47, %v2640_v46  ;;  %4137 = vmatpush.xpose.msrb.mxu3 %v781_v45 }
 0x162   : > { %4077 = vmatpush.xpose.msrb.mxu0 %v778_v44  ;;  %v2679_v51 = vpop.f32.mrf.mxu2  ;;  %3938 = vmatmul.f32.vlgmr.msrb.gmra.mxu1 %v368_v48 }
 0x163   : > { %v2699_v52 = vpop.f32.mrf.mxu3  ;;  %v2680_v53 = vadd.f32 %v2679_v51, %v2660_v50  ;;  %4097 = vmatpush.xpose.msrb.mxu1 %v779_v49 }
 0x165   : > { %v2700_v56 = vadd.f32 %v2699_v52, %v2680_v53 }
 0x166   : > { %v2719_v57 = vpop.f32.mrf.mxu0 }
 0x167   : > { %v2720_v59 = vadd.f32 %v2719_v57, %v2700_v56  ;;  %4038 = vmatmul.f32.vlgmr.msra.gmra.mxu2 %v373_v54  ;;  %v2739_v60 = vpop.f32.mrf.mxu1 }
 0x168   : > { %4058 = vmatmul.f32.vlgmr.msra.gmra.mxu3 %v374_v55 }
 0x169   : > { %3998 = vmatmul.f32.vlgmr.msra.gmra.mxu0 %v371_v58  ;;  %v2740_v62 = vadd.f32 %v2739_v60, %v2720_v59 }
 0x16a   : > { %v2759_v63 = vpop.f32.mrf.mxu2  ;;  %4018 = vmatmul.f32.vlgmr.msra.gmra.mxu1 %v372_v61 }
 0x16b   : > { %v2779_v0 = vpop.f32.mrf.mxu3  ;;  %v2760_v1 = vadd.f32 %v2759_v63, %v2740_v62 }
 0x16d   : > { %v2780_v4 = vadd.f32 %v2779_v0, %v2760_v1 }
 0x16e   : > { %v2799_v5 = vpop.f32.mrf.mxu0 }
 0x16f   : > { %v2800_v7 = vadd.f32 %v2799_v5, %v2780_v4  ;;  %4118 = vmatmul.f32.vlgmr.msrb.gmra.mxu2 %v377_v2  ;;  %v2819_v8 = vpop.f32.mrf.mxu1 }
 0x170   : > { %4138 = vmatmul.f32.vlgmr.msrb.gmra.mxu3 %v378_v3 }
 0x171   : > { %4078 = vmatmul.f32.vlgmr.msrb.gmra.mxu0 %v375_v6  ;;  %v2820_v10 = vadd.f32 %v2819_v8, %v2800_v7 }
 0x172   : > { %v2839_v11 = vpop.f32.mrf.mxu2  ;;  %4098 = vmatmul.f32.vlgmr.msrb.gmra.mxu1 %v376_v9 }
 0x173   : > { %v2859_v12 = vpop.f32.mrf.mxu3  ;;  %v2840_v13 = vadd.f32 %v2839_v11, %v2820_v10 }
 0x175   : > { %v2860_v14 = vadd.f32 %v2859_v12, %v2840_v13 }
 0x176   : > { %v2879_v15 = vpop.f32.mrf.mxu0 }
 0x177   : > { %v2880_v16 = vadd.f32 %v2879_v15, %v2860_v14  ;;  %v2899_v17 = vpop.f32.mrf.mxu1 }
 0x179   : > { %v2900_v18 = vadd.f32 %v2899_v17, %v2880_v16 }
 0x17a   : > { %v2919_v19 = vpop.f32.mrf.mxu2 }
 0x17b   : > { %v2939_v20 = vpop.f32.mrf.mxu3  ;;  %v2920_v21 = vadd.f32 %v2919_v19, %v2900_v18 }
 0x17d   : > { %v2940_v22 = vadd.f32 %v2939_v20, %v2920_v21 }
 0x17e   : > { %v2959_v23 = vpop.f32.mrf.mxu0 }
 0x17f   : > { %v2960_v24 = vadd.f32 %v2959_v23, %v2940_v22  ;;  %v2979_v25 = vpop.f32.mrf.mxu1 }
 0x181   : > { %v2980_v26 = vadd.f32 %v2979_v25, %v2960_v24 }
 0x182   : > { %v2999_v27 = vpop.f32.mrf.mxu2 }
 0x183   : > { %v3019_v28 = vpop.f32.mrf.mxu3  ;;  %v3000_v29 = vadd.f32 %v2999_v27, %v2980_v26 }
 0x185   : > { %v3020_v30 = vadd.f32 %v3019_v28, %v3000_v29 }
 0x186   : > { %v3039_v31 = vpop.f32.mrf.mxu0 }
 0x187   : > { %v3040_v32 = vadd.f32 %v3039_v31, %v3020_v30  ;;  %v3059_v33 = vpop.f32.mrf.mxu1 }
 0x189   : > { %v3060_v34 = vadd.f32 %v3059_v33, %v3040_v32 }
 0x18a   : > { %v3079_v35 = vpop.f32.mrf.mxu2 }
 0x18b   : > { %v3099_v36 = vpop.f32.mrf.mxu3  ;;  %v3080_v37 = vadd.f32 %v3079_v35, %v3060_v34 }
 0x18d   : > { %v3100_v38 = vadd.f32 %v3099_v36, %v3080_v37 }
 0x18e   : > { %v3119_v39 = vpop.f32.mrf.mxu0 }
 0x18f   : > { %v3120_v40 = vadd.f32 %v3119_v39, %v3100_v38  ;;  %v3139_v41 = vpop.f32.mrf.mxu1 }
 0x191   : > { %v3140_v42 = vadd.f32 %v3139_v41, %v3120_v40 }
 0x192   : > { %v3159_v43 = vpop.f32.mrf.mxu2 }
 0x193   : > { %v3179_v44 = vpop.f32.mrf.mxu3  ;;  %v3160_v45 = vadd.f32 %v3159_v43, %v3140_v42 }
 0x195   : > { %v3180_v46 = vadd.f32 %v3179_v44, %v3160_v45 }
 0x196   : > { %v3199_v47 = vpop.f32.mrf.mxu0 }
 0x197   : > { %v3200_v48 = vadd.f32 %v3199_v47, %v3180_v46  ;;  %v3219_v49 = vpop.f32.mrf.mxu1 }
 0x199   : > { %v3220_v50 = vadd.f32 %v3219_v49, %v3200_v48 }
 0x19a   : > { %v3239_v51 = vpop.f32.mrf.mxu2 }
 0x19b   : > { %v3259_v52 = vpop.f32.mrf.mxu3  ;;  %v3240_v53 = vadd.f32 %v3239_v51, %v3220_v50 }
 0x19d   : > { %v3260_v54 = vadd.f32 %v3259_v52, %v3240_v53 }
 0x19e   : > { %v3279_v55 = vpop.f32.mrf.mxu0 }
 0x19f   : > { %v3280_v56 = vadd.f32 %v3279_v55, %v3260_v54  ;;  %v3299_v57 = vpop.f32.mrf.mxu1 }
 0x1a1   : > { %v3300_v58 = vadd.f32 %v3299_v57, %v3280_v56 }
 0x1a2   : > { %v3319_v59 = vpop.f32.mrf.mxu2 }
 0x1a3   : > { %v3339_v60 = vpop.f32.mrf.mxu3  ;;  %v3320_v61 = vadd.f32 %v3319_v59, %v3300_v58 }
 0x1a5   : > { %v3340_v62 = vadd.f32 %v3339_v60, %v3320_v61 }
 0x1a6   : > { %v3359_v63 = vpop.f32.mrf.mxu0 }
 0x1a7   : > { %v3360_v0 = vadd.f32 %v3359_v63, %v3340_v62  ;;  %v3379_v1 = vpop.f32.mrf.mxu1 }
 0x1a9   : > { %v3380_v2 = vadd.f32 %v3379_v1, %v3360_v0 }
 0x1aa   : > { %v3399_v3 = vpop.f32.mrf.mxu2 }
 0x1ab   : > { %v3419_v4 = vpop.f32.mrf.mxu3  ;;  %v3400_v5 = vadd.f32 %v3399_v3, %v3380_v2 }
 0x1ad   : > { %v3420_v6 = vadd.f32 %v3419_v4, %v3400_v5 }
 0x1ae   : > { %v3439_v7 = vpop.f32.mrf.mxu0 }
 0x1af   : > { %v3440_v8 = vadd.f32 %v3439_v7, %v3420_v6  ;;  %v3459_v9 = vpop.f32.mrf.mxu1 }
 0x1b1   : > { %v3460_v10 = vadd.f32 %v3459_v9, %v3440_v8 }
 0x1b2   : > { %v3479_v11 = vpop.f32.mrf.mxu2 }
 0x1b3   : > { %v3499_v12 = vpop.f32.mrf.mxu3  ;;  %v3480_v13 = vadd.f32 %v3479_v11, %v3460_v10 }
 0x1b5   : > { %v3500_v14 = vadd.f32 %v3499_v12, %v3480_v13 }
 0x1b6   : > { %v3519_v15 = vpop.f32.mrf.mxu0 }
 0x1b7   : > { %v3520_v16 = vadd.f32 %v3519_v15, %v3500_v14  ;;  %v3539_v17 = vpop.f32.mrf.mxu1  ;;  %v4307_v14 = vld [vmem:[#allocation6] ss:$0 sm:$0xff] }
 0x1b9   : > { %v3540_v18 = vadd.f32 %v3539_v17, %v3520_v16 }
 0x1ba   : > { %v3559_v19 = vpop.f32.mrf.mxu2 }
 0x1bb   : > { %v3579_v20 = vpop.f32.mrf.mxu3  ;;  %v3560_v21 = vadd.f32 %v3559_v19, %v3540_v18 }
 0x1bd   : > { %v3580_v22 = vadd.f32 %v3579_v20, %v3560_v21 }
 0x1be   : > { %v3599_v23 = vpop.f32.mrf.mxu0 }
 0x1bf   : > { %v3600_v24 = vadd.f32 %v3599_v23, %v3580_v22  ;;  %v3619_v25 = vpop.f32.mrf.mxu1 }
 0x1c1   : > { %v3620_v26 = vadd.f32 %v3619_v25, %v3600_v24 }
 0x1c2   : > { %v3639_v27 = vpop.f32.mrf.mxu2 }
 0x1c3   : > { %v3659_v28 = vpop.f32.mrf.mxu3  ;;  %v3640_v29 = vadd.f32 %v3639_v27, %v3620_v26 }
 0x1c5   : > { %v3660_v30 = vadd.f32 %v3659_v28, %v3640_v29 }
 0x1c6   : > { %v3679_v31 = vpop.f32.mrf.mxu0 }
 0x1c7   : > { %v3680_v32 = vadd.f32 %v3679_v31, %v3660_v30  ;;  %v3699_v33 = vpop.f32.mrf.mxu1 }
 0x1c9   : > { %v3700_v34 = vadd.f32 %v3699_v33, %v3680_v32 }
 0x1ca   : > { %v3719_v35 = vpop.f32.mrf.mxu2 }
 0x1cb   : > { %v3739_v36 = vpop.f32.mrf.mxu3  ;;  %v3720_v37 = vadd.f32 %v3719_v35, %v3700_v34 }
 0x1cd   : > { %v3740_v38 = vadd.f32 %v3739_v36, %v3720_v37 }
 0x1ce   : > { %v3759_v39 = vpop.f32.mrf.mxu0 }
 0x1cf   : > { %v3760_v40 = vadd.f32 %v3759_v39, %v3740_v38  ;;  %v3779_v41 = vpop.f32.mrf.mxu1 }
 0x1d1   : > { %v3780_v42 = vadd.f32 %v3779_v41, %v3760_v40 }
 0x1d2   : > { %v3799_v43 = vpop.f32.mrf.mxu2 }
 0x1d3   : > { %v3819_v44 = vpop.f32.mrf.mxu3  ;;  %v3800_v45 = vadd.f32 %v3799_v43, %v3780_v42 }
 0x1d5   : > { %v3820_v46 = vadd.f32 %v3819_v44, %v3800_v45 }
 0x1d6   : > { %v3839_v47 = vpop.f32.mrf.mxu0 }
 0x1d7   : > { %v3840_v48 = vadd.f32 %v3839_v47, %v3820_v46  ;;  %v3859_v49 = vpop.f32.mrf.mxu1 }
 0x1d9   : > { %v3860_v50 = vadd.f32 %v3859_v49, %v3840_v48 }
 0x1da   : > { %v3879_v51 = vpop.f32.mrf.mxu2 }
 0x1db   : > { %v3899_v52 = vpop.f32.mrf.mxu3  ;;  %v3880_v53 = vadd.f32 %v3879_v51, %v3860_v50 }
 0x1dd   : > { %v3900_v54 = vadd.f32 %v3899_v52, %v3880_v53 }
 0x1de   : > { %v3919_v55 = vpop.f32.mrf.mxu0 }
 0x1df   : > { %v3920_v56 = vadd.f32 %v3919_v55, %v3900_v54  ;;  %v3939_v57 = vpop.f32.mrf.mxu1 }
 0x1e1   : > { %v3940_v58 = vadd.f32 %v3939_v57, %v3920_v56 }
 0x1e2   : > { %v3959_v59 = vpop.f32.mrf.mxu2 }
 0x1e3   : > { %v3979_v60 = vpop.f32.mrf.mxu3  ;;  %v3960_v61 = vadd.f32 %v3959_v59, %v3940_v58 }
 0x1e5   : > { %v3980_v62 = vadd.f32 %v3979_v60, %v3960_v61 }
 0x1e6   : > { %v3999_v63 = vpop.f32.mrf.mxu0 }
 0x1e7   : > { %v4000_v0 = vadd.f32 %v3999_v63, %v3980_v62  ;;  %v4019_v1 = vpop.f32.mrf.mxu1 }
 0x1e9   : > { %v4020_v2 = vadd.f32 %v4019_v1, %v4000_v0 }
 0x1ea   : > { %v4039_v3 = vpop.f32.mrf.mxu2 }
 0x1eb   : > { %v4059_v4 = vpop.f32.mrf.mxu3  ;;  %v4040_v5 = vadd.f32 %v4039_v3, %v4020_v2 }
 0x1ed   : > { %v4060_v6 = vadd.f32 %v4059_v4, %v4040_v5 }
 0x1ee   : > { %v4079_v7 = vpop.f32.mrf.mxu0 }
 0x1ef   : > { %v4080_v8 = vadd.f32 %v4079_v7, %v4060_v6  ;;  %v4099_v9 = vpop.f32.mrf.mxu1 }
 0x1f1   : > { %v4100_v10 = vadd.f32 %v4099_v9, %v4080_v8 }
 0x1f2   : > { %v4119_v11 = vpop.f32.mrf.mxu2 }
 0x1f3   : > { %v4139_v12 = vpop.f32.mrf.mxu3  ;;  %v4120_v13 = vadd.f32 %v4119_v11, %v4100_v10 }
 0x1f5   : > { %v4140_v15 = vadd.f32 %v4139_v12, %v4120_v13 }
 0x1f7   : > { %v4145_v16 = vadd.f32 %v4307_v14, %v4140_v15 }
 0x1f9   : > { %4147 = vst.msk [vmem:[%s217_s9] sm:$0xff] %vm4146_vm0, %v4145_v16 }
 0x1fa PF: > { %p14_p4 = scmp.ge.s32.totalorder %s4506_s29, 4   ;;  %s4735_s12 = smov %s4428_s13 }
 0x1fb   : > { %s4736_s13 = smov %s4432_s14  ;;  %s4737_s14 = smov %s4517_s6 }
 0x1fc   : > { %s4738_s15 = smov %s4506_s29  ;;  %16 = sbr.rel (!%p14_p4) target bundleno = 4 (0x4), region = 83 }
 0x201   :  { %4167 = vsyncpa [#allocation3], 1 }
 0x202   :  { %4169 = vsyncpa [#allocation3 + $0x1], 1 }
 0x203   :  { %4170 = vsyncpa [#allocation5], 1 }

</bundles_post_ra>
